<compile_context>
chip_gen: v7x
topology: tpu7x:2x2x1
jax: 0.10.0
libtpu: 0.0.40
codegen_flags: <defaults>
</compile_context>

<pallas_src>
import functools

import jax
import jax.numpy as jnp
from jax.experimental import pallas as pl
from jax.experimental.pallas import tpu as pltpu

_SCRATCH_DTYPE = jnp.bfloat16   # MXU-native dtype for the VMEM-resident intermediate


def _round_up(v, m):
    return (v + m - 1) // m * m


# ------------------------------ Pallas kernel ------------------------------- #

def _basic_block_kernel(xin_ref, w1_ref, wsc_ref, s1_ref, b1_ref, ssc_ref, bsc_ref,
                        w2_ref, s2_ref, b2_ref, rw_ref, out_ref, o1pad_scr,
                        *, Ho, Wo, Cin, Cp, stride, rezero, conv_shortcut):
    """Whole BasicBlock for one batch image: three MXU passes + elementwise."""
    M = Ho * Wo
    Eh = Ho + (2 // stride)            # per-phase plane extent along H inside xin

    # --- conv1 taps, gathered in VMEM from the phase-decomposed padded input.
    def tap(kh, kw):
        p = (kh % stride) * stride + (kw % stride)        # phase plane (static int)
        dh, dw = kh // stride, kw // stride               # in-plane offset
        sl = xin_ref[0, p * Eh + dh:p * Eh + dh + Ho, dw:dw + Wo, :]
        return sl.reshape(M, Cin)                         # bf16

    taps = [tap(kh, kw) for kh in range(3) for kw in range(3)]
    patch1 = jnp.concatenate(taps, axis=-1)               # (M, 9*Cin) bf16

    # --- MXU pass 1: conv1 (im2col), bf16 operands, f32 accumulation.
    y1 = jnp.dot(patch1, w1_ref[...], preferred_element_type=jnp.float32)
    out1 = jnp.maximum(y1 * s1_ref[...] + b1_ref[...], 0.0)   # relu(bn1(conv1(x)))

    # --- shortcut: its 1x1 stride-s input is exactly conv1's centre tap.
    center = taps[4]                                       # (M, Cin) bf16
    if conv_shortcut:
        sc = jnp.dot(center, wsc_ref[...], preferred_element_type=jnp.float32)
        sc = sc * ssc_ref[...] + bsc_ref[...]              # bn_sc(conv_sc(x)), no relu
    else:
        # Identity shortcut (stride == 1, Cin == Cp).
        # TODO(synk): identity path takes a bf16 round-trip of x (tiny precision loss).
        sc = center.astype(jnp.float32)

    # --- Halo-pad out1 in VMEM (bf16): the intermediate never leaves the chip.
    # Only the 1-px border needs zeroing; the interior is fully rewritten each step.
    # Re-zeroed every step so megacore sharding of the batch axis stays correct.
    o1pad_scr[0:1, 0:Wo + 2, :] = jnp.zeros((1, Wo + 2, Cp), _SCRATCH_DTYPE)
    o1pad_scr[Ho + 1:Ho + 2, 0:Wo + 2, :] = jnp.zeros((1, Wo + 2, Cp), _SCRATCH_DTYPE)
    o1pad_scr[0:Ho + 2, 0:1, :] = jnp.zeros((Ho + 2, 1, Cp), _SCRATCH_DTYPE)
    o1pad_scr[0:Ho + 2, Wo + 1:Wo + 2, :] = jnp.zeros((Ho + 2, 1, Cp), _SCRATCH_DTYPE)
    o1pad_scr[1:Ho + 1, 1:Wo + 1, :] = out1.reshape(Ho, Wo, Cp).astype(_SCRATCH_DTYPE)

    # --- MXU pass 2: conv2 (3x3, stride 1) as a single (M, 9*Cp) im2col matmul.
    patch2 = jnp.concatenate(
        [o1pad_scr[kh:kh + Ho, kw:kw + Wo, :].reshape(M, Cp)
         for kh in range(3) for kw in range(3)], axis=-1)   # (M, 9*Cp) bf16
    main = jnp.dot(patch2, w2_ref[...], preferred_element_type=jnp.float32)
    main = main * s2_ref[...] + b2_ref[...]                  # folded bn2

    # --- ReZero residual combine.
    if rezero:
        out = sc + rw_ref[0] * jnp.maximum(main, 0.0)
    else:
        out = jnp.maximum(sc + main, 0.0)
    out_ref[...] = out.reshape(1, M, Cp)


# ------------------------------ Pallas wrapper ------------------------------ #

def basic_block_forward(x_nchw, params, stride, rezero=True):
    """Forward pass of BasicBlock. Input/output in NCHW (PyTorch convention).

    When stacking blocks, keep activations in NHWC between blocks and drop the two
    transposes below (they are pure HBM overhead once blocks are chained).
    """
    assert stride in (1, 2), "ResNet BasicBlock only uses stride 1 or 2"
    x = jnp.transpose(x_nchw, (0, 2, 3, 1))            # NCHW -> NHWC
    N, H, W, Cin = x.shape
    assert H % stride == 0 and W % stride == 0
    Ho, Wo = H // stride, W // stride
    Cp = params["w1"].shape[-1]
    conv_shortcut = (stride != 1) or (Cin != Cp)
    M = Ho * Wo

    # Padded input, phase-decomposed for the stride (space-to-depth) so every conv1
    # tap is a unit-stride slice inside the kernel.  No HBM im2col inflation.
    xpad = jnp.pad(x, ((0, 0), (1, 1), (1, 1), (0, 0)))
    if stride == 1:
        Eh, Ew, P = Ho + 2, Wo + 2, 1
        xin = xpad                                       # (N, Ho+2, Wo+2, Cin)
    else:
        Eh, Ew, P = Ho + 1, Wo + 1, 4
        xin = xpad.reshape(N, Eh, 2, Ew, 2, Cin)
        xin = xin.transpose(0, 2, 4, 1, 3, 5).reshape(N, P * Eh, Ew, Cin)
    xin = xin.astype(jnp.bfloat16)

    # bf16 weights (MXU-native); im2col (kh, kw, ci) row ordering matches the taps.
    w1c = params["w1"].reshape(9 * Cin, Cp).astype(jnp.bfloat16)
    w2c = params["w2"].reshape(9 * Cp, Cp).astype(jnp.bfloat16)
    wsc = params.get("wsc", jnp.zeros((Cin, Cp), jnp.float32)).astype(jnp.bfloat16)
    ssc = params.get("ssc", jnp.ones((1, Cp), jnp.float32))
    bsc = params.get("bsc", jnp.zeros((1, Cp), jnp.float32))

    Ws = _round_up(Wo + 2, 8)                            # tile-aligned scratch sublanes

    kernel = functools.partial(
        _basic_block_kernel, Ho=Ho, Wo=Wo, Cin=Cin, Cp=Cp,
        stride=stride, rezero=rezero, conv_shortcut=conv_shortcut)

    flops = 2 * N * M * (9 * Cin * Cp + (Cin * Cp if conv_shortcut else 0) + 9 * Cp * Cp)
    bytes_accessed = (xin.size * 2 + (w1c.size + w2c.size + wsc.size) * 2
                      + 6 * Cp * 4 + N * M * Cp * 4)

    out = pl.pallas_call(
        kernel,
        out_shape=jax.ShapeDtypeStruct((N, M, Cp), jnp.float32),
        grid=(N,),
        in_specs=[
            pl.BlockSpec((1, P * Eh, Ew, Cin), lambda n: (n, 0, 0, 0)),   # activation
            pl.BlockSpec((9 * Cin, Cp), lambda n: (0, 0)),                # w1 (im2col)
            pl.BlockSpec((Cin, Cp), lambda n: (0, 0)),                    # w shortcut
            pl.BlockSpec((1, Cp), lambda n: (0, 0)),                      # bn1 scale
            pl.BlockSpec((1, Cp), lambda n: (0, 0)),                      # bn1 bias
            pl.BlockSpec((1, Cp), lambda n: (0, 0)),                      # bn_sc scale
            pl.BlockSpec((1, Cp), lambda n: (0, 0)),                      # bn_sc bias
            pl.BlockSpec((9 * Cp, Cp), lambda n: (0, 0)),                 # w2 (im2col)
            pl.BlockSpec((1, Cp), lambda n: (0, 0)),                      # bn2 scale
            pl.BlockSpec((1, Cp), lambda n: (0, 0)),                      # bn2 bias
            pl.BlockSpec(memory_space=pltpu.MemorySpace.SMEM),            # rezero scalar
        ],
        out_specs=pl.BlockSpec((1, M, Cp), lambda n: (n, 0, 0)),
        scratch_shapes=[pltpu.VMEM((Ho + 2, Ws, Cp), _SCRATCH_DTYPE)],
        compiler_params=pltpu.CompilerParams(dimension_semantics=("parallel",)),
        cost_estimate=pl.CostEstimate(flops=flops, transcendentals=0,
                                      bytes_accessed=bytes_accessed),
    )(xin, w1c, wsc, params["s1"], params["b1"], ssc, bsc,
      w2c, params["s2"], params["b2"], params["rw"])

    out = out.reshape(N, Ho, Wo, Cp)
    return jnp.transpose(out, (0, 3, 1, 2))              # NHWC -> NCHW


# -------------------------- parameter construction -------------------------- #

def make_quaternion_conv_weight(key, in_c, out_c, k):
    """Assemble the Hamilton-product block weight of a QuaternionConv, HWIO layout."""
    assert in_c % 4 == 0 and out_c % 4 == 0
    oq, iq = out_c // 4, in_c // 4
    kr, ki, kj, kk = jax.random.split(key, 4)
    shape = (oq, iq, k, k)
    scale = 1.0 / jnp.sqrt(float(in_c * k * k))
    r = jax.random.normal(kr, shape, jnp.float32) * scale
    i = jax.random.normal(ki, shape, jnp.float32) * scale
    j = jax.random.normal(kj, shape, jnp.float32) * scale
    q = jax.random.normal(kk, shape, jnp.float32) * scale
    row_r = jnp.concatenate([r, -i, -j, -q], axis=1)
    row_i = jnp.concatenate([i,  r, -q,  j], axis=1)
    row_j = jnp.concatenate([j,  q,  r, -i], axis=1)
    row_k = jnp.concatenate([q, -j,  i,  r], axis=1)
    w_oihw = jnp.concatenate([row_r, row_i, row_j, row_k], axis=0)   # (out_c, in_c, k, k)
    return jnp.transpose(w_oihw, (2, 3, 1, 0))                       # (k, k, in_c, out_c)


def make_bn_params(key, c, eps=1e-5):
    kg, kb, km, kv = jax.random.split(key, 4)
    gamma = 1.0 + 0.1 * jax.random.normal(kg, (c,), jnp.float32)
    beta = 0.1 * jax.random.normal(kb, (c,), jnp.float32)
    mean = 0.1 * jax.random.normal(km, (c,), jnp.float32)
    var = jnp.abs(jax.random.normal(kv, (c,), jnp.float32)) + 0.5
    scale = gamma / jnp.sqrt(var + eps)
    bias = beta - mean * scale
    return scale.reshape(1, c), bias.reshape(1, c)


# ------------------------------ pure-JAX reference --------------------------- #

def reference_forward(x_nchw, params, stride, rezero=True):
    prec = jax.lax.Precision.HIGHEST

    def conv(x, w_hwio, s, pad):
        return jax.lax.conv_general_dilated(
            x, w_hwio, window_strides=(s, s), padding=[(pad, pad), (pad, pad)],
            dimension_numbers=("NCHW", "HWIO", "NCHW"), precision=prec)

    def bn(x, scale, bias):
        return x * scale.reshape(1, -1, 1, 1) + bias.reshape(1, -1, 1, 1)

    in_planes = x_nchw.shape[1]
    planes = params["w1"].shape[-1]
    out = jax.nn.relu(bn(conv(x_nchw, params["w1"], stride, 1), params["s1"], params["b1"]))
    out = bn(conv(out, params["w2"], 1, 1), params["s2"], params["b2"])
    if stride != 1 or in_planes != planes:
        sc = bn(conv(x_nchw, params["wsc"][None, None], stride, 0),
                params["ssc"], params["bsc"])
    else:
        sc = x_nchw
    if rezero:
        return sc + params["rw"][0] * jax.nn.relu(out)
    return jax.nn.relu(sc + out)


# ------------------------------------ main ----------------------------------- #

if __name__ == "__main__":
    key = jax.random.PRNGKey(0)
    N, in_planes, H, W = 2, 8, 16, 16
    planes, stride = 16, 2            # stride != 1 and in_planes != planes -> conv shortcut

    kx, k1, k2, k3, k4, k5, k6 = jax.random.split(key, 7)
    x = jax.random.normal(kx, (N, in_planes, H, W), jnp.float32)     # NCHW, like PyTorch

    params = {
        "w1": make_quaternion_conv_weight(k1, in_planes, planes, 3),
        "w2": make_quaternion_conv_weight(k2, planes, planes, 3),
        "wsc": make_quaternion_conv_weight(k3, in_planes, planes, 1)[0, 0],  # (Cin, planes)
        "rw": jnp.full((1,), 0.5, jnp.float32),   # res_weight (nn.Parameter of shape (1,))
    }
    params["s1"], params["b1"] = make_bn_params(k4, planes)
    params["s2"], params["b2"] = make_bn_params(k5, planes)
    params["ssc"], params["bsc"] = make_bn_params(k6, planes)

    out = basic_block_forward(x, params, stride=stride, rezero=True)
    out = jax.block_until_ready(out)

    ref = reference_forward(x, params, stride=stride, rezero=True)
    assert out.shape == ref.shape == (N, planes, H // stride, W // stride), (out.shape, ref.shape)
    max_err = float(jnp.max(jnp.abs(out - ref)))
    # bf16 MXU operands vs f32 HIGHEST reference -> looser tolerance than the f32 path.
    assert jnp.allclose(out, ref, atol=5e-2, rtol=5e-2), f"max abs err {max_err}"

    print("KERNEL_OK")
</pallas_src>

<mosaic_0001>
module attributes {stable_mosaic.version = 11 : i64} {
  func.func @_basic_block_kernel(%arg0: i32, %arg1: memref<1x36x9x8xbf16, #tpu.memory_space<vmem>>, %arg2: memref<72x16xbf16, #tpu.memory_space<vmem>>, %arg3: memref<8x16xbf16, #tpu.memory_space<vmem>>, %arg4: memref<1x16xf32, #tpu.memory_space<vmem>>, %arg5: memref<1x16xf32, #tpu.memory_space<vmem>>, %arg6: memref<1x16xf32, #tpu.memory_space<vmem>>, %arg7: memref<1x16xf32, #tpu.memory_space<vmem>>, %arg8: memref<144x16xbf16, #tpu.memory_space<vmem>>, %arg9: memref<1x16xf32, #tpu.memory_space<vmem>>, %arg10: memref<1x16xf32, #tpu.memory_space<vmem>>, %arg11: memref<1xf32, #tpu.memory_space<smem>>, %arg12: memref<1x64x16xf32, #tpu.memory_space<vmem>>, %arg13: memref<10x16x16xbf16, #tpu.memory_space<vmem>>) attributes {dimension_semantics = [#tpu.dimension_semantics<parallel>], iteration_bounds = array<i64: 2>, scalar_prefetch = 0 : i64, scratch_operands = 1 : i64, tpu.core_type = #tpu.core_type<tc>, window_params = [{transform_indices = @transform_0, window_bounds = array<i64: 1, 36, 9, 8>}, {pipeline_mode = #tpu.pipeline_mode<synchronous>, transform_indices = @transform_1, window_bounds = array<i64: 72, 16>}, {pipeline_mode = #tpu.pipeline_mode<synchronous>, transform_indices = @transform_2, window_bounds = array<i64: 8, 16>}, {pipeline_mode = #tpu.pipeline_mode<synchronous>, transform_indices = @transform_3, window_bounds = array<i64: 1, 16>}, {pipeline_mode = #tpu.pipeline_mode<synchronous>, transform_indices = @transform_4, window_bounds = array<i64: 1, 16>}, {pipeline_mode = #tpu.pipeline_mode<synchronous>, transform_indices = @transform_5, window_bounds = array<i64: 1, 16>}, {pipeline_mode = #tpu.pipeline_mode<synchronous>, transform_indices = @transform_6, window_bounds = array<i64: 1, 16>}, {pipeline_mode = #tpu.pipeline_mode<synchronous>, transform_indices = @transform_7, window_bounds = array<i64: 144, 16>}, {pipeline_mode = #tpu.pipeline_mode<synchronous>, transform_indices = @transform_8, window_bounds = array<i64: 1, 16>}, {pipeline_mode = #tpu.pipeline_mode<synchronous>, transform_indices = @transform_9, window_bounds = array<i64: 1, 16>}, {transform_indices = @transform_10, window_bounds = array<i64: 1>}, {transform_indices = @transform_11, window_bounds = array<i64: 1, 64, 16>}]} {
    %c0 = arith.constant 0 : index
    %c0_0 = arith.constant 0 : index
    %c0_1 = arith.constant 0 : index
    %c0_2 = arith.constant 0 : index
    %0 = vector.load %arg1[%c0, %c0_0, %c0_1, %c0_2] : memref<1x36x9x8xbf16, #tpu.memory_space<vmem>>, vector<1x8x8x8xbf16>
    %1 = vector.shape_cast %0 : vector<1x8x8x8xbf16> to vector<8x8x8xbf16>
    %2 = vector.shape_cast %1 : vector<8x8x8xbf16> to vector<64x8xbf16>
    %c0_3 = arith.constant 0 : index
    %c9 = arith.constant 9 : index
    %c0_4 = arith.constant 0 : index
    %c0_5 = arith.constant 0 : index
    %3 = vector.load %arg1[%c0_3, %c9, %c0_4, %c0_5] : memref<1x36x9x8xbf16, #tpu.memory_space<vmem>>, vector<1x8x8x8xbf16>
    %4 = vector.shape_cast %3 : vector<1x8x8x8xbf16> to vector<8x8x8xbf16>
    %5 = vector.shape_cast %4 : vector<8x8x8xbf16> to vector<64x8xbf16>
    %c0_6 = arith.constant 0 : index
    %c0_7 = arith.constant 0 : index
    %c1 = arith.constant 1 : index
    %c0_8 = arith.constant 0 : index
    %6 = vector.load %arg1[%c0_6, %c0_7, %c1, %c0_8] : memref<1x36x9x8xbf16, #tpu.memory_space<vmem>>, vector<1x8x8x8xbf16>
    %7 = vector.shape_cast %6 : vector<1x8x8x8xbf16> to vector<8x8x8xbf16>
    %8 = vector.shape_cast %7 : vector<8x8x8xbf16> to vector<64x8xbf16>
    %c0_9 = arith.constant 0 : index
    %c18 = arith.constant 18 : index
    %c0_10 = arith.constant 0 : index
    %c0_11 = arith.constant 0 : index
    %9 = vector.load %arg1[%c0_9, %c18, %c0_10, %c0_11] : memref<1x36x9x8xbf16, #tpu.memory_space<vmem>>, vector<1x8x8x8xbf16>
    %10 = vector.shape_cast %9 : vector<1x8x8x8xbf16> to vector<8x8x8xbf16>
    %11 = vector.shape_cast %10 : vector<8x8x8xbf16> to vector<64x8xbf16>
    %c0_12 = arith.constant 0 : index
    %c27 = arith.constant 27 : index
    %c0_13 = arith.constant 0 : index
    %c0_14 = arith.constant 0 : index
    %12 = vector.load %arg1[%c0_12, %c27, %c0_13, %c0_14] : memref<1x36x9x8xbf16, #tpu.memory_space<vmem>>, vector<1x8x8x8xbf16>
    %13 = vector.shape_cast %12 : vector<1x8x8x8xbf16> to vector<8x8x8xbf16>
    %14 = vector.shape_cast %13 : vector<8x8x8xbf16> to vector<64x8xbf16>
    %c0_15 = arith.constant 0 : index
    %c18_16 = arith.constant 18 : index
    %c1_17 = arith.constant 1 : index
    %c0_18 = arith.constant 0 : index
    %15 = vector.load %arg1[%c0_15, %c18_16, %c1_17, %c0_18] : memref<1x36x9x8xbf16, #tpu.memory_space<vmem>>, vector<1x8x8x8xbf16>
    %16 = vector.shape_cast %15 : vector<1x8x8x8xbf16> to vector<8x8x8xbf16>
    %17 = vector.shape_cast %16 : vector<8x8x8xbf16> to vector<64x8xbf16>
    %c0_19 = arith.constant 0 : index
    %c1_20 = arith.constant 1 : index
    %c0_21 = arith.constant 0 : index
    %c0_22 = arith.constant 0 : index
    %18 = vector.load %arg1[%c0_19, %c1_20, %c0_21, %c0_22] : memref<1x36x9x8xbf16, #tpu.memory_space<vmem>>, vector<1x8x8x8xbf16>
    %19 = vector.shape_cast %18 : vector<1x8x8x8xbf16> to vector<8x8x8xbf16>
    %20 = vector.shape_cast %19 : vector<8x8x8xbf16> to vector<64x8xbf16>
    %c0_23 = arith.constant 0 : index
    %c10 = arith.constant 10 : index
    %c0_24 = arith.constant 0 : index
    %c0_25 = arith.constant 0 : index
    %21 = vector.load %arg1[%c0_23, %c10, %c0_24, %c0_25] : memref<1x36x9x8xbf16, #tpu.memory_space<vmem>>, vector<1x8x8x8xbf16>
    %22 = vector.shape_cast %21 : vector<1x8x8x8xbf16> to vector<8x8x8xbf16>
    %23 = vector.shape_cast %22 : vector<8x8x8xbf16> to vector<64x8xbf16>
    %c0_26 = arith.constant 0 : index
    %c1_27 = arith.constant 1 : index
    %c1_28 = arith.constant 1 : index
    %c0_29 = arith.constant 0 : index
    %24 = vector.load %arg1[%c0_26, %c1_27, %c1_28, %c0_29] : memref<1x36x9x8xbf16, #tpu.memory_space<vmem>>, vector<1x8x8x8xbf16>
    %25 = vector.shape_cast %24 : vector<1x8x8x8xbf16> to vector<8x8x8xbf16>
    %26 = vector.shape_cast %25 : vector<8x8x8xbf16> to vector<64x8xbf16>
    %27 = tpu.concatenate %2, %5, %8, %11, %14, %17, %20, %23, %26 in 1 : vector<64x8xbf16>, vector<64x8xbf16>, vector<64x8xbf16>, vector<64x8xbf16>, vector<64x8xbf16>, vector<64x8xbf16>, vector<64x8xbf16>, vector<64x8xbf16>, vector<64x8xbf16> -> vector<64x72xbf16>
    %c0_30 = arith.constant 0 : index
    %c0_31 = arith.constant 0 : index
    %28 = vector.load %arg2[%c0_30, %c0_31] : memref<72x16xbf16, #tpu.memory_space<vmem>>, vector<72x16xbf16>
    %cst = arith.constant dense<0.000000e+00> : vector<64x16xf32>
    %29 = tpu.matmul %27, %28, %cst {dimension_numbers = #tpu.dot_dimension_numbers<[1], [0], [0], [1], [0, 0, 1, 1], [], []>} : vector<64x72xbf16>, vector<72x16xbf16>, vector<64x16xf32> -> vector<64x16xf32>
    %c0_32 = arith.constant 0 : index
    %c0_33 = arith.constant 0 : index
    %30 = vector.load %arg4[%c0_32, %c0_33] : memref<1x16xf32, #tpu.memory_space<vmem>>, vector<1x16xf32>
    %31 = vector.broadcast %30 : vector<1x16xf32> to vector<64x16xf32>
    %32 = arith.mulf %29, %31 : vector<64x16xf32>
    %c0_34 = arith.constant 0 : index
    %c0_35 = arith.constant 0 : index
    %33 = vector.load %arg5[%c0_34, %c0_35] : memref<1x16xf32, #tpu.memory_space<vmem>>, vector<1x16xf32>
    %34 = vector.broadcast %33 : vector<1x16xf32> to vector<64x16xf32>
    %35 = arith.addf %32, %34 : vector<64x16xf32>
    %cst_36 = arith.constant 0.000000e+00 : f32
    %36 = vector.broadcast %cst_36 : f32 to vector<64x16xf32>
    %37 = arith.maximumf %35, %36 : vector<64x16xf32>
    %c0_37 = arith.constant 0 : index
    %c0_38 = arith.constant 0 : index
    %38 = vector.load %arg3[%c0_37, %c0_38] : memref<8x16xbf16, #tpu.memory_space<vmem>>, vector<8x16xbf16>
    %cst_39 = arith.constant dense<0.000000e+00> : vector<64x16xf32>
    %39 = tpu.matmul %14, %38, %cst_39 {dimension_numbers = #tpu.dot_dimension_numbers<[1], [0], [0], [1], [0, 0, 1, 1], [], []>} : vector<64x8xbf16>, vector<8x16xbf16>, vector<64x16xf32> -> vector<64x16xf32>
    %c0_40 = arith.constant 0 : index
    %c0_41 = arith.constant 0 : index
    %40 = vector.load %arg6[%c0_40, %c0_41] : memref<1x16xf32, #tpu.memory_space<vmem>>, vector<1x16xf32>
    %41 = vector.broadcast %40 : vector<1x16xf32> to vector<64x16xf32>
    %42 = arith.mulf %39, %41 : vector<64x16xf32>
    %c0_42 = arith.constant 0 : index
    %c0_43 = arith.constant 0 : index
    %43 = vector.load %arg7[%c0_42, %c0_43] : memref<1x16xf32, #tpu.memory_space<vmem>>, vector<1x16xf32>
    %44 = vector.broadcast %43 : vector<1x16xf32> to vector<64x16xf32>
    %45 = arith.addf %42, %44 : vector<64x16xf32>
    %cst_44 = arith.constant 0.000000e+00 : bf16
    %46 = vector.broadcast %cst_44 : bf16 to vector<1x10x16xbf16>
    %c0_45 = arith.constant 0 : index
    %c0_46 = arith.constant 0 : index
    %c0_47 = arith.constant 0 : index
    %47 = vector.load %arg13[%c0_45, %c0_46, %c0_47] : memref<10x16x16xbf16, #tpu.memory_space<vmem>>, vector<1x10x16xbf16>
    tpu.vector_store %arg13[%c0_45, %c0_46, %c0_47], %46 {strides = array<i32>} : memref<10x16x16xbf16, #tpu.memory_space<vmem>>, vector<1x10x16xbf16>,
    %cst_48 = arith.constant 0.000000e+00 : bf16
    %48 = vector.broadcast %cst_48 : bf16 to vector<1x10x16xbf16>
    %c9_49 = arith.constant 9 : index
    %c0_50 = arith.constant 0 : index
    %c0_51 = arith.constant 0 : index
    %49 = vector.load %arg13[%c9_49, %c0_50, %c0_51] : memref<10x16x16xbf16, #tpu.memory_space<vmem>>, vector<1x10x16xbf16>
    tpu.vector_store %arg13[%c9_49, %c0_50, %c0_51], %48 {strides = array<i32>} : memref<10x16x16xbf16, #tpu.memory_space<vmem>>, vector<1x10x16xbf16>,
    %cst_52 = arith.constant 0.000000e+00 : bf16
    %50 = vector.broadcast %cst_52 : bf16 to vector<10x1x16xbf16>
    %c0_53 = arith.constant 0 : index
    %c0_54 = arith.constant 0 : index
    %c0_55 = arith.constant 0 : index
    %51 = vector.load %arg13[%c0_53, %c0_54, %c0_55] : memref<10x16x16xbf16, #tpu.memory_space<vmem>>, vector<10x1x16xbf16>
    tpu.vector_store %arg13[%c0_53, %c0_54, %c0_55], %50 {strides = array<i32>} : memref<10x16x16xbf16, #tpu.memory_space<vmem>>, vector<10x1x16xbf16>,
    %cst_56 = arith.constant 0.000000e+00 : bf16
    %52 = vector.broadcast %cst_56 : bf16 to vector<10x1x16xbf16>
    %c0_57 = arith.constant 0 : index
    %c9_58 = arith.constant 9 : index
    %c0_59 = arith.constant 0 : index
    %53 = vector.load %arg13[%c0_57, %c9_58, %c0_59] : memref<10x16x16xbf16, #tpu.memory_space<vmem>>, vector<10x1x16xbf16>
    tpu.vector_store %arg13[%c0_57, %c9_58, %c0_59], %52 {strides = array<i32>} : memref<10x16x16xbf16, #tpu.memory_space<vmem>>, vector<10x1x16xbf16>,
    %54 = vector.shape_cast %37 : vector<64x16xf32> to vector<8x8x16xf32>
    %55 = arith.truncf %54 : vector<8x8x16xf32> to vector<8x8x16xbf16>
    %c1_60 = arith.constant 1 : index
    %c1_61 = arith.constant 1 : index
    %c0_62 = arith.constant 0 : index
    %56 = vector.load %arg13[%c1_60, %c1_61, %c0_62] : memref<10x16x16xbf16, #tpu.memory_space<vmem>>, vector<8x8x16xbf16>
    tpu.vector_store %arg13[%c1_60, %c1_61, %c0_62], %55 {strides = array<i32>} : memref<10x16x16xbf16, #tpu.memory_space<vmem>>, vector<8x8x16xbf16>,
    %c0_63 = arith.constant 0 : index
    %c0_64 = arith.constant 0 : index
    %c0_65 = arith.constant 0 : index
    %57 = vector.load %arg13[%c0_63, %c0_64, %c0_65] : memref<10x16x16xbf16, #tpu.memory_space<vmem>>, vector<8x8x16xbf16>
    %58 = vector.shape_cast %57 : vector<8x8x16xbf16> to vector<64x16xbf16>
    %c0_66 = arith.constant 0 : index
    %c1_67 = arith.constant 1 : index
    %c0_68 = arith.constant 0 : index
    %59 = vector.load %arg13[%c0_66, %c1_67, %c0_68] : memref<10x16x16xbf16, #tpu.memory_space<vmem>>, vector<8x8x16xbf16>
    %60 = vector.shape_cast %59 : vector<8x8x16xbf16> to vector<64x16xbf16>
    %c0_69 = arith.constant 0 : index
    %c2 = arith.constant 2 : index
    %c0_70 = arith.constant 0 : index
    %61 = vector.load %arg13[%c0_69, %c2, %c0_70] : memref<10x16x16xbf16, #tpu.memory_space<vmem>>, vector<8x8x16xbf16>
    %62 = vector.shape_cast %61 : vector<8x8x16xbf16> to vector<64x16xbf16>
    %c1_71 = arith.constant 1 : index
    %c0_72 = arith.constant 0 : index
    %c0_73 = arith.constant 0 : index
    %63 = vector.load %arg13[%c1_71, %c0_72, %c0_73] : memref<10x16x16xbf16, #tpu.memory_space<vmem>>, vector<8x8x16xbf16>
    %64 = vector.shape_cast %63 : vector<8x8x16xbf16> to vector<64x16xbf16>
    %c1_74 = arith.constant 1 : index
    %c1_75 = arith.constant 1 : index
    %c0_76 = arith.constant 0 : index
    %65 = vector.load %arg13[%c1_74, %c1_75, %c0_76] : memref<10x16x16xbf16, #tpu.memory_space<vmem>>, vector<8x8x16xbf16>
    %66 = vector.shape_cast %65 : vector<8x8x16xbf16> to vector<64x16xbf16>
    %c1_77 = arith.constant 1 : index
    %c2_78 = arith.constant 2 : index
    %c0_79 = arith.constant 0 : index
    %67 = vector.load %arg13[%c1_77, %c2_78, %c0_79] : memref<10x16x16xbf16, #tpu.memory_space<vmem>>, vector<8x8x16xbf16>
    %68 = vector.shape_cast %67 : vector<8x8x16xbf16> to vector<64x16xbf16>
    %c2_80 = arith.constant 2 : index
    %c0_81 = arith.constant 0 : index
    %c0_82 = arith.constant 0 : index
    %69 = vector.load %arg13[%c2_80, %c0_81, %c0_82] : memref<10x16x16xbf16, #tpu.memory_space<vmem>>, vector<8x8x16xbf16>
    %70 = vector.shape_cast %69 : vector<8x8x16xbf16> to vector<64x16xbf16>
    %c2_83 = arith.constant 2 : index
    %c1_84 = arith.constant 1 : index
    %c0_85 = arith.constant 0 : index
    %71 = vector.load %arg13[%c2_83, %c1_84, %c0_85] : memref<10x16x16xbf16, #tpu.memory_space<vmem>>, vector<8x8x16xbf16>
    %72 = vector.shape_cast %71 : vector<8x8x16xbf16> to vector<64x16xbf16>
    %c2_86 = arith.constant 2 : index
    %c2_87 = arith.constant 2 : index
    %c0_88 = arith.constant 0 : index
    %73 = vector.load %arg13[%c2_86, %c2_87, %c0_88] : memref<10x16x16xbf16, #tpu.memory_space<vmem>>, vector<8x8x16xbf16>
    %74 = vector.shape_cast %73 : vector<8x8x16xbf16> to vector<64x16xbf16>
    %75 = tpu.concatenate %58, %60, %62, %64, %66, %68, %70, %72, %74 in 1 : vector<64x16xbf16>, vector<64x16xbf16>, vector<64x16xbf16>, vector<64x16xbf16>, vector<64x16xbf16>, vector<64x16xbf16>, vector<64x16xbf16>, vector<64x16xbf16>, vector<64x16xbf16> -> vector<64x144xbf16>
    %c0_89 = arith.constant 0 : index
    %c0_90 = arith.constant 0 : index
    %76 = vector.load %arg8[%c0_89, %c0_90] : memref<144x16xbf16, #tpu.memory_space<vmem>>, vector<144x16xbf16>
    %cst_91 = arith.constant dense<0.000000e+00> : vector<64x16xf32>
    %77 = tpu.matmul %75, %76, %cst_91 {dimension_numbers = #tpu.dot_dimension_numbers<[1], [0], [0], [1], [0, 0, 1, 1], [], []>} : vector<64x144xbf16>, vector<144x16xbf16>, vector<64x16xf32> -> vector<64x16xf32>
    %c0_92 = arith.constant 0 : index
    %c0_93 = arith.constant 0 : index
    %78 = vector.load %arg9[%c0_92, %c0_93] : memref<1x16xf32, #tpu.memory_space<vmem>>, vector<1x16xf32>
    %79 = vector.broadcast %78 : vector<1x16xf32> to vector<64x16xf32>
    %80 = arith.mulf %77, %79 : vector<64x16xf32>
    %c0_94 = arith.constant 0 : index
    %c0_95 = arith.constant 0 : index
    %81 = vector.load %arg10[%c0_94, %c0_95] : memref<1x16xf32, #tpu.memory_space<vmem>>, vector<1x16xf32>
    %82 = vector.broadcast %81 : vector<1x16xf32> to vector<64x16xf32>
    %83 = arith.addf %80, %82 : vector<64x16xf32>
    %c0_96 = arith.constant 0 : index
    %84 = memref.load %arg11[%c0_96] : memref<1xf32, #tpu.memory_space<smem>>
    %cst_97 = arith.constant 0.000000e+00 : f32
    %85 = vector.broadcast %cst_97 : f32 to vector<64x16xf32>
    %86 = arith.maximumf %83, %85 : vector<64x16xf32>
    %87 = vector.broadcast %84 : f32 to vector<64x16xf32>
    %88 = arith.mulf %87, %86 : vector<64x16xf32>
    %89 = arith.addf %45, %88 : vector<64x16xf32>
    %90 = vector.shape_cast %89 : vector<64x16xf32> to vector<1x64x16xf32>
    %c0_98 = arith.constant 0 : index
    %c0_99 = arith.constant 0 : index
    %c0_100 = arith.constant 0 : index
    %91 = vector.load %arg12[%c0_98, %c0_99, %c0_100] : memref<1x64x16xf32, #tpu.memory_space<vmem>>, vector<1x64x16xf32>
    tpu.vector_store %arg12[%c0_98, %c0_99, %c0_100], %90 {strides = array<i32>} : memref<1x64x16xf32, #tpu.memory_space<vmem>>, vector<1x64x16xf32>,
    return
  }
  func.func @transform_0(%arg0: i32) -> (i32, i32, i32, i32) {
    %c0_i32 = arith.constant 0 : i32
    %c0_i32_0 = arith.constant 0 : i32
    %c0_i32_1 = arith.constant 0 : i32
    %c0_i32_2 = arith.constant 0 : i32
    return %arg0, %c0_i32, %c0_i32_0, %c0_i32_1 : i32, i32, i32, i32
  }
  func.func @transform_1(%arg0: i32) -> (i32, i32) {
    %c0_i32 = arith.constant 0 : i32
    %c0_i32_0 = arith.constant 0 : i32
    %c0_i32_1 = arith.constant 0 : i32
    return %c0_i32, %c0_i32_0 : i32, i32
  }
  func.func @transform_2(%arg0: i32) -> (i32, i32) {
    %c0_i32 = arith.constant 0 : i32
    %c0_i32_0 = arith.constant 0 : i32
    %c0_i32_1 = arith.constant 0 : i32
    return %c0_i32, %c0_i32_0 : i32, i32
  }
  func.func @transform_3(%arg0: i32) -> (i32, i32) {
    %c0_i32 = arith.constant 0 : i32
    %c0_i32_0 = arith.constant 0 : i32
    %c0_i32_1 = arith.constant 0 : i32
    return %c0_i32, %c0_i32_0 : i32, i32
  }
  func.func @transform_4(%arg0: i32) -> (i32, i32) {
    %c0_i32 = arith.constant 0 : i32
    %c0_i32_0 = arith.constant 0 : i32
    %c0_i32_1 = arith.constant 0 : i32
    return %c0_i32, %c0_i32_0 : i32, i32
  }
  func.func @transform_5(%arg0: i32) -> (i32, i32) {
    %c0_i32 = arith.constant 0 : i32
    %c0_i32_0 = arith.constant 0 : i32
    %c0_i32_1 = arith.constant 0 : i32
    return %c0_i32, %c0_i32_0 : i32, i32
  }
  func.func @transform_6(%arg0: i32) -> (i32, i32) {
    %c0_i32 = arith.constant 0 : i32
    %c0_i32_0 = arith.constant 0 : i32
    %c0_i32_1 = arith.constant 0 : i32
    return %c0_i32, %c0_i32_0 : i32, i32
  }
  func.func @transform_7(%arg0: i32) -> (i32, i32) {
    %c0_i32 = arith.constant 0 : i32
    %c0_i32_0 = arith.constant 0 : i32
    %c0_i32_1 = arith.constant 0 : i32
    return %c0_i32, %c0_i32_0 : i32, i32
  }
  func.func @transform_8(%arg0: i32) -> (i32, i32) {
    %c0_i32 = arith.constant 0 : i32
    %c0_i32_0 = arith.constant 0 : i32
    %c0_i32_1 = arith.constant 0 : i32
    return %c0_i32, %c0_i32_0 : i32, i32
  }
  func.func @transform_9(%arg0: i32) -> (i32, i32) {
    %c0_i32 = arith.constant 0 : i32
    %c0_i32_0 = arith.constant 0 : i32
    %c0_i32_1 = arith.constant 0 : i32
    return %c0_i32, %c0_i32_0 : i32, i32
  }
  func.func @transform_10(%arg0: i32) -> i32 {
    %c0_i32 = arith.constant 0 : i32
    %c0_i32_0 = arith.constant 0 : i32
    return %c0_i32 : i32
  }
  func.func @transform_11(%arg0: i32) -> (i32, i32, i32) {
    %c0_i32 = arith.constant 0 : i32
    %c0_i32_0 = arith.constant 0 : i32
    %c0_i32_1 = arith.constant 0 : i32
    return %arg0, %c0_i32, %c0_i32_0 : i32, i32, i32
  }
}

</mosaic_0001>

<bundles_post_ra>
// kernel: tpu_custom_call.1
= control target key start
LH: loop header
LB: loop body
LE: loop exit
PB: predicated region body
PF: predicated region fallthrough
CT: control target
= control target key end

     0   :  { %s3409_s19 = smov 0   ;;  %s4258_s0 = inlined_call_operand.vmem [shape: bf16[2,36,9,8], index: 0, kind: input, shape index: {}]   ;;  %s4259_s1 = inlined_call_operand.vmem [shape: bf16[72,16], index: 1, kind: input, shape index: {}]   ;;  %s4260_s2 = inlined_call_operand.vmem [shape: bf16[8,16], index: 2, kind: input, shape index: {}]   ;;  %s4261_s3 = inlined_call_operand.vmem [shape: f32[1,16], index: 3, kind: input, shape index: {}]   ;;  %s4262_s4 = inlined_call_operand.vmem [shape: f32[1,16], index: 4, kind: input, shape index: {}]   ;;  %s4263_s5 = inlined_call_operand.vmem [shape: f32[1,16], index: 5, kind: input, shape index: {}]   ;;  %s4264_s6 = inlined_call_operand.vmem [shape: f32[1,16], index: 6, kind: input, shape index: {}]   ;;  %s4265_s7 = inlined_call_operand.vmem [shape: bf16[144,16], index: 7, kind: input, shape index: {}]   ;;  %s4266_s8 = inlined_call_operand.vmem [shape: f32[1,16], index: 8, kind: input, shape index: {}]   ;;  %s4267_s9 = inlined_call_operand.vmem [shape: f32[1,16], index: 9, kind: input, shape index: {}]   ;;  %s4268_s10 = inlined_call_operand.<no memory space> [shape: f32[1], index: 10, kind: input, shape index: {}]   ;;  %s4269_s11 = inlined_call_operand.vmem [shape: f32[2,64,16], index: 11, kind: output, shape index: {}]  }
   0x1   :  { %16 = sst [smem:[#allocation3]] %s4268_s10 }
   0x2 LB: > { %s2805_s20 = sadd.s32 4294967295, %s3332_s19   ;;  %p2809_p0 = scmp.ge.s32.totalorder %s3332_s19, 1  ;;  %s3332_s19 = sphi %s3409_s19, %s22_s19  }
   0x3   : > { %p338_p1 = scmp.lt.s32.totalorder %s3332_s19, 3 }
   0x5   : > { %p339_p2 = pnand %p2809_p0, %p338_p1 }
   0x6   : > { %p378_p3 = scmp.lt.s32.totalorder (!%p339_p2), %s2805_s20, 1  ;;  %s3334_s24 = smov (!%p339_p2), 8   ;;  %vm414_vm0 = vsmask.f32 (!%p339_p2), 3328  ;;  %vm415_vm1 = vsmask.f32 (!%p339_p2), 7440 }
   0x7   : > { %342 = sbr.rel (%p339_p2) target bundleno = 859 (0x35b), region = 64  ;;  %s3335_s25 = smov (!%p339_p2), 24   ;;  %vm1025_vm2 = vcmask (!%p339_p2), 64512   ;;  %vm3469_vm3 = vmor (!%p339_p2), %vm414_vm0, %vm415_vm1  ;;  %v3201_v62 = vld [vmem:[%s4259_s1] sm:$0xff] (!%p339_p2)   ;;  %vm1146_vm4 = vcmask (!%p339_p2), 1043456   ;;  %vm1038_vm5 = vcmask (!%p339_p2), 130048  }
   0x8   : > { %s3336_s26 = smov (!%p339_p2), 32   ;;  %3110 = vmatprep.subr.bf16.mxu0 (!%p339_p2), %v3201_v62  ;;  %s3337_s12 = smov (!%p339_p2), 16   ;;  %vm1047_vm6 = vcmask (!%p339_p2), 195584   ;;  %vm1056_vm7 = vcmask (!%p339_p2), 261120   ;;  %vm1065_vm8 = vcmask (!%p339_p2), 326656   ;;  %vm1074_vm9 = vcmask (!%p339_p2), 392192  }
   0x9   : > { %3111 = vmatpush3.bf16.msra.mxu0 (!%p339_p2), %v3201_v62  ;;  %s3338_s17 = smov (!%p339_p2), 40   ;;  %s3339_s18 = smov (!%p339_p2), 48   ;;  %vm1083_vm10 = vcmask (!%p339_p2), 457728   ;;  %vm1092_vm11 = vcmask (!%p339_p2), 523264   ;;  %vm1137_vm12 = vcmask (!%p339_p2), 588800   ;;  %vm1364_vm13 = vcmask (!%p339_p2), 126976  }
   0xa   : > { %s3341_s21 = smov (!%p339_p2), 64   ;;  %vm1368_vm14 = vcmask (!%p339_p2), 122880   ;;  %vm1369_vm15 = vsmask.f32 (!%p339_p2), 256  ;;  %vm1401_vm1 = vcmask (!%p339_p2), 126980   ;;  %s3343_s22 = smov (!%p339_p2), 80  }
   0xb   : > { %vm3733_vm0 = vmand (!%p339_p2), %vm1368_vm14, %vm1369_vm15  ;;  %vm2515_vm14 = vcmask (!%p339_p2), 785408   ;;  %vm2524_vm15 = vcmask (!%p339_p2), 916480  }
   0xe   : > { %s4281_s20 = smov (!%p378_p3, %s2805_s20), 1 }
   0xf   : > { %s3158_s10 = smul.u32 288, %s4281_s20  ;;  %s3095_s30 = sshll.u32 %s4281_s20, 6 }
  0x10   : > { %s4199_s14 = scalar_lea.vmem %s4269_s11, %s3095_s30 }
  0x11   : > { %s3423_s23 = scalar_lea.vmem %s4258_s0, %s3158_s10  ;;  %s3340_s10 = smov 56  }
  0x12   : > { %v3179_v0 = vld [vmem:[%s3423_s23 + $0x48] ss:$8 sps:$4 sm:$0xff]   ;;  %v2823_v1 = vld [vmem:[%s3423_s23 + $0xa0] sm:$0xf]  ;;  %v2822_v16 = vld [vmem:[%s3423_s23 + $0x98] sm:$0xf] }
  0x13   : > { %v2824_v2 = vld [vmem:[%s3423_s23 + $0xa8] sm:$0xf]  ;;  %845 = vrot.lane.b32.xlu0 %v3179_v0, %s3334_s24  ;;  %v584_v6 = vshrl.u32 %v2823_v1, 16  ;;  %v587_v7 = vshll.u32 %v2823_v1, 16  ;;  %v3181_v8 = vld [vmem:[%s3423_s23 + $0x58] ss:$8 sps:$4 sm:$0xff]  }
  0x14   : > { %v598_v3 = vshrl.u32 %v2824_v2, 16  ;;  %v601_v4 = vshll.u32 %v2824_v2, 16  ;;  %v2882_v5 = vcombine.low %v2823_v1, %v2824_v2  ;;  %v3182_v13 = vld [vmem:[%s3423_s23 + $0xe8] ss:$8 sps:$4 sm:$0xff]   ;;  %v3436_v19 = vld [vmem:[%s3423_s23] sm:$0xf] }
  0x15   : > { %v586_v11 = vrot.slane %v584_v6, 4  ;;  %v589_v12 = vrot.slane %v587_v7, 5  ;;  %v2821_v14 = vld [vmem:[%s3423_s23 + $0x90] sm:$0xf]  ;;  %v570_v21 = vshrl.u32 %v2822_v16, 16  ;;  %v573_v22 = vshll.u32 %v2822_v16, 16 }
  0x16   : > { %v600_v9 = vrot.slane %v598_v3, 4  ;;  %v603_v10 = vrot.slane %v601_v4, 5  ;;  %895 = vrot.lane.b32.xlu1 %v2882_v5, %s3335_s25  ;;  %v556_v17 = vshrl.u32 %v2821_v14, 16  ;;  %v559_v18 = vshll.u32 %v2821_v14, 16  ;;  %v3439_v24 = vld [vmem:[%s3423_s23 + $0x8] sm:$0xf] }
  0x17   : > { %847 = vrot.lane.b32.xlu0 %v3181_v8, %s3334_s24  ;;  %v590_v20 = vor.u32 %v589_v12, %v586_v11  ;;  %v2881_v23 = vcombine.low %v2821_v14, %v2822_v16  ;;  %v406_v25 = vld [vmem:[%s3423_s23 + $0x4] sm:$0x1]  ;;  %v407_v29 = vld [vmem:[%s3423_s23 + $0xc] sm:$0x1]  ;;  %v418_v30 = vshrl.u32 %v3436_v19, 16  ;;  %v572_v32 = vrot.slane %v570_v21, 4 }
  0x18   : > { %v604_v15 = vor.u32 %v603_v10, %v600_v9  ;;  %v558_v27 = vrot.slane %v556_v17, 4  ;;  %v561_v28 = vrot.slane %v559_v18, 5  ;;  %v575_v33 = vrot.slane %v573_v22, 5  ;;  %v3184_v41 = vld [vmem:[%s3423_s23 + $0xd8] ss:$8 sps:$4 sm:$0xff]  }
  0x19   : > { %v3447_v31 = vrot.slane %v590_v20, 4  ;;  %v421_v34 = vshll.u32 %v3436_v19, 16  ;;  %v420_v35 = vrot.slane %v418_v30, 4  ;;  %v427_v36 = vshll.u32 %v406_v25, 16  ;;  %v3455_v42 = vld [vmem:[%s3423_s23 + $0x10] sm:$0xf]  ;;  %3130 = vmatprep.mubr.msk.bf16.mxu1 %vm1025_vm2, %v3184_v41 }
  0x1a   : > { %v3442_v26 = vrot.slane %v604_v15, 4  ;;  %923 = vrot.lane.b32.xlu1 %v3182_v13, %s3336_s26  ;;  %v432_v37 = vshrl.u32 %v3439_v24, 16  ;;  %v435_v38 = vshll.u32 %v3439_v24, 16  ;;  %v441_v40 = vshll.u32 %v407_v29, 16  ;;  %v3458_v48 = vld [vmem:[%s3423_s23 + $0x18] sm:$0xf] }
  0x1b   : > { %893 = vrot.lane.b32.xlu0 %v2881_v23, %s3335_s25  ;;  %v423_v39 = vrot.slane %v421_v34, 5  ;;  %v562_v43 = vor.u32 %v561_v28, %v558_v27  ;;  %v576_v44 = vor.u32 %v575_v33, %v572_v32  ;;  %v429_v45 = vrot.slane %v427_v36, 5  ;;  %v408_v52 = vld [vmem:[%s3423_s23 + $0x14] sm:$0x1]  ;;  %v409_v53 = vld [vmem:[%s3423_s23 + $0x1c] sm:$0x1] }
  0x1c   : > { %v434_v46 = vrot.slane %v432_v37, 4  ;;  %v437_v47 = vrot.slane %v435_v38, 5  ;;  %v446_v49 = vshrl.u32 %v3455_v42, 16  ;;  %v443_v51 = vrot.slane %v441_v40, 5  ;;  %v2837_v61 = vld [vmem:[%s3423_s23 + $0x94] sm:$0x1] }
  0x1d   : > { %v424_v50 = vor.u32 %v423_v39, %v420_v35  ;;  %v449_v54 = vshll.u32 %v3455_v42, 16  ;;  %v2869_v55 = vcombine.low %v3436_v19, %v3439_v24  ;;  %v455_v59 = vshll.u32 %v408_v52, 16  ;;  %v2838_v3 = vld [vmem:[%s3423_s23 + $0x9c] sm:$0x1]  ;;  %v2839_v8 = vld [vmem:[%s3423_s23 + $0xa4] sm:$0x1] }
  0x1e   : > { %v438_v57 = vor.u32 %v437_v47, %v434_v46  ;;  %v448_v58 = vrot.slane %v446_v49, 4  ;;  %v460_v60 = vshrl.u32 %v3458_v48, 16  ;;  %v463_v1 = vshll.u32 %v3458_v48, 16  ;;  %v2840_v13 = vld [vmem:[%s3423_s23 + $0xac] sm:$0x1]  ;;  %v3203_v37 = vld [vmem:[%s4259_s1 + $0x10] sm:$0xff]  }
  0x1f   : > { %921 = vrot.lane.b32.xlu0 %v3184_v41, %s3336_s26  ;;  %v425_v63 = vrot.slane %v424_v50, 4  ;;  %v451_v0 = vrot.slane %v449_v54, 5  ;;  %v469_v2 = vshll.u32 %v409_v53, 16  ;;  %v457_v5 = vrot.slane %v455_v59, 5  ;;  %v3486_v14 = vld [vmem:[%s3423_s23 + $0x8] sm:$0xf] }
  0x20   : > { %v439_v4 = vrot.slane %v438_v57, 4  ;;  %v462_v6 = vrot.slane %v460_v60, 4  ;;  %v563_v7 = vrot.slane %v562_v43, 4  ;;  %v465_v11 = vrot.slane %v463_v1, 5  ;;  %v3202_v20 = vld [vmem:[%s4259_s1 + $0x8] sm:$0xff]   ;;  %v3204_v50 = vld [vmem:[%s4259_s1 + $0x18] sm:$0xff]  }
  0x21   : > { %v430_v9 = vsel %vm3469_vm3, %v425_v63, %v429_v45  ;;  %v452_v10 = vor.u32 %v451_v0, %v448_v58  ;;  %v471_v12 = vrot.slane %v469_v2, 5  ;;  %v565_v16 = vshll.u32 %v2837_v61, 16  ;;  %v2846_v27 = vld [vmem:[%s3423_s23 + $0x10] sm:$0xf]  ;;  %3112 = vmatprep.subr.bf16.mxu0 %v3202_v20  ;;  %v3507_v43 = vld [vmem:[%s3423_s23 + $0x18] sm:$0xf] }
  0x22   : > { %v444_v15 = vsel %vm3469_vm3, %v439_v4, %v443_v51  ;;  %v577_v17 = vrot.slane %v576_v44, 4  ;;  %v579_v18 = vshll.u32 %v2838_v3, 16  ;;  %v466_v23 = vor.u32 %v465_v11, %v462_v6  ;;  %3113 = vmatpush3.bf16.msra.mxu0 %v3202_v20  ;;  %v3515_v49 = vld [vmem:[%s3423_s23 + $0x20] sm:$0xf]  ;;  %v2861_v57 = vld [vmem:[%s3423_s23 + $0xc] sm:$0x1] }
  0x23   : > { %v2877_v21 = vcombine.low %v430_v9, %v444_v15  ;;  %v453_v22 = vrot.slane %v452_v10, 4  ;;  %v593_v25 = vshll.u32 %v2839_v8, 16  ;;  %v567_v28 = vrot.slane %v565_v16, 5  ;;  %3114 = vmatprep.subr.bf16.mxu0 %v3203_v37  ;;  %v2862_v0 = vld [vmem:[%s3423_s23 + $0x14] sm:$0x1] }
  0x24   : > { %v581_v29 = vrot.slane %v579_v18, 5  ;;  %v607_v30 = vshll.u32 %v2840_v13, 16  ;;  %v694_v32 = vshrl.u32 %v3486_v14, 16  ;;  %v467_v34 = vrot.slane %v466_v23, 4  ;;  %v3187_v4 = vld [vmem:[%s3423_s23 + $0x50] ss:$8 sps:$4 sm:$0xff]  }
  0x25   : > { %865 = vrot.lane.b32.xlu1 %v2877_v21, %s3337_s12  ;;  %v458_v33 = vsel %vm3469_vm3, %v453_v22, %v457_v5  ;;  %v595_v35 = vrot.slane %v593_v25, 5  ;;  %v697_v36 = vshll.u32 %v3486_v14, 16  ;;  %v568_v38 = vsel %vm3469_vm3, %v563_v7, %v567_v28  ;;  %v2863_v6 = vld [vmem:[%s3423_s23 + $0x1c] sm:$0x1]  ;;  %v2864_v7 = vld [vmem:[%s3423_s23 + $0x24] sm:$0x1] }
  0x26   : > { %v582_v39 = vsel %vm3469_vm3, %v577_v17, %v581_v29  ;;  %v609_v40 = vrot.slane %v607_v30, 5  ;;  %v696_v41 = vrot.slane %v694_v32, 4  ;;  %v472_v44 = vsel %vm3469_vm3, %v467_v34, %v471_v12  ;;  %3115 = vmatpush3.bf16.msra.mxu0 %v3203_v37  ;;  %v3540_v25 = vld [vmem:[%s3423_s23 + $0x20] sm:$0xf]  ;;  %v3547_v32 = vld [vmem:[%s3423_s23 + $0x28] sm:$0xf] }
  0x27   : > { %v2889_v45 = vcombine.low %v568_v38, %v582_v39  ;;  %v596_v46 = vsel %vm3469_vm3, %v3447_v31, %v595_v35  ;;  %v699_v47 = vrot.slane %v697_v36, 5  ;;  %v2878_v51 = vcombine.low %v458_v33, %v472_v44  ;;  %3116 = vmatprep.subr.bf16.mxu0 %v3204_v50  ;;  %v410_v33 = vld [vmem:[%s3423_s23 + $0x24] sm:$0x1]  ;;  %v411_v36 = vld [vmem:[%s3423_s23 + $0x2c] sm:$0x1] }
  0x28   : > { %v610_v52 = vsel %vm3469_vm3, %v3442_v26, %v609_v40  ;;  %v708_v53 = vshrl.u32 %v2846_v27, 16  ;;  %v711_v54 = vshll.u32 %v2846_v27, 16  ;;  %v2893_v58 = vcombine.low %v3486_v14, %v2846_v27  ;;  %v3559_v39 = vld [vmem:[%s3423_s23 + $0x30] sm:$0xf]  ;;  %v3188_v40 = vld [vmem:[%s3423_s23 + $0x60] ss:$8 sps:$4 sm:$0xff]  }
  0x29   : > { %941 = vrot.lane.b32.xlu0 %v2889_v45, %s3338_s17  ;;  %v2890_v31 = vcombine.low %v596_v46, %v610_v52  ;;  %v722_v59 = vshrl.u32 %v3507_v43, 16  ;;  %v725_v60 = vshll.u32 %v3507_v43, 16  ;;  %867 = vrot.lane.b32.xlu1 %v2878_v51, %s3337_s12  ;;  %v736_v62 = vshrl.u32 %v3515_v49, 16  ;;  %v412_v46 = vld [vmem:[%s3423_s23 + $0x34] sm:$0x1] }
  0x2a   : > { %v710_v26 = vrot.slane %v708_v53, 4  ;;  %v713_v61 = vrot.slane %v711_v54, 5  ;;  %v739_v63 = vshll.u32 %v3515_v49, 16  ;;  %v2894_v3 = vcombine.low %v3507_v43, %v3515_v49  ;;  %3117 = vmatpush3.bf16.msra.mxu0 %v3204_v50  ;;  %v3569_v52 = vld [vmem:[%s3423_s23 + $0x38] sm:$0xf] }
  0x2b   : > { %v724_v1 = vrot.slane %v722_v59, 4  ;;  %v727_v2 = vrot.slane %v725_v60, 5  ;;  %v700_v5 = vor.u32 %v699_v47, %v696_v41  ;;  %v738_v8 = vrot.slane %v736_v62, 4  ;;  %v3576_v62 = vld [vmem:[%s3423_s23 + $0xb0] sm:$0xf] }
  0x2c   : > { %v741_v9 = vrot.slane %v739_v63, 5  ;;  %v703_v10 = vshll.u32 %v2861_v57, 16  ;;  %v714_v11 = vor.u32 %v713_v61, %v710_v26  ;;  %v717_v13 = vshll.u32 %v2862_v0, 16  ;;  %v3189_v63 = vld [vmem:[%s3423_s23 + $0x68] ss:$8 sps:$4 sm:$0xff]  }
  0x2d   : > { %969 = vrot.lane.b32.xlu0 %v2893_v58, %s3339_s18  ;;  %v701_v12 = vrot.slane %v700_v5, 4  ;;  %v728_v14 = vor.u32 %v727_v2, %v724_v1  ;;  %v731_v15 = vshll.u32 %v2863_v6, 16  ;;  %943 = vrot.lane.b32.xlu1 %v2890_v31, %s3338_s17  ;;  %v745_v20 = vshll.u32 %v2864_v7, 16  ;;  %v413_v31 = vld [vmem:[%s3423_s23 + $0x3c] sm:$0x1] }
  0x2e   : > { %v705_v16 = vrot.slane %v703_v10, 5  ;;  %v715_v17 = vrot.slane %v714_v11, 4  ;;  %v742_v18 = vor.u32 %v741_v9, %v738_v8  ;;  %v719_v21 = vrot.slane %v717_v13, 5  ;;  %v2826_v8 = vld [vmem:[%s3423_s23 + $0xb8] sm:$0xf] }
  0x2f   : > { %v729_v22 = vrot.slane %v728_v14, 4  ;;  %v733_v23 = vrot.slane %v731_v15, 5  ;;  %v2870_v27 = vcombine.low %v3455_v42, %v3458_v48  ;;  %v747_v30 = vrot.slane %v745_v20, 5  ;;  %v3190_v9 = vld [vmem:[%s3423_s23 + $0x78] ss:$8 sps:$4 sm:$0xff]  }
  0x30   : > { %v706_v28 = vsel %vm3469_vm3, %v701_v12, %v705_v16  ;;  %v743_v29 = vrot.slane %v742_v18, 4  ;;  %v720_v34 = vsel %vm3469_vm3, %v715_v17, %v719_v21  ;;  %v474_v37 = vshrl.u32 %v3540_v25, 16  ;;  %v3586_v14 = vld [vmem:[%s3423_s23 + $0xc0] sm:$0xf]  ;;  %v3593_v20 = vld [vmem:[%s3423_s23 + $0xc8] sm:$0xf] }
  0x31   : > { %997 = vrot.lane.b32.xlu0 %v3187_v4, %s3340_s10  ;;  %v734_v35 = vsel %vm3469_vm3, %v729_v22, %v733_v23  ;;  %v477_v38 = vshll.u32 %v3540_v25, 16  ;;  %971 = vrot.lane.b32.xlu1 %v2894_v3, %s3339_s18  ;;  %v2901_v41 = vcombine.low %v706_v28, %v720_v34  ;;  %v483_v44 = vshll.u32 %v410_v33, 16 }
  0x32   : > { %v748_v43 = vsel %vm3469_vm3, %v743_v29, %v747_v30  ;;  %v488_v45 = vshrl.u32 %v3547_v32, 16  ;;  %v476_v49 = vrot.slane %v474_v37, 4  ;;  %v491_v51 = vshll.u32 %v3547_v32, 16 }
  0x33   : > { %v2902_v47 = vcombine.low %v734_v35, %v748_v43  ;;  %v479_v50 = vrot.slane %v477_v38, 5  ;;  %v485_v53 = vrot.slane %v483_v44, 5  ;;  %v497_v57 = vshll.u32 %v411_v36, 16 }
  0x34   : > { %v490_v54 = vrot.slane %v488_v45, 4  ;;  %v502_v58 = vshrl.u32 %v3559_v39, 16  ;;  %v493_v60 = vrot.slane %v491_v51, 5  ;;  %v505_v26 = vshll.u32 %v3559_v39, 16  ;;  %v2841_v45 = vld [vmem:[%s3423_s23 + $0xb4] sm:$0x1] }
  0x35   : > { %1017 = vrot.lane.b32.xlu0 %v2901_v41, %s3341_s21  ;;  %v480_v59 = vor.u32 %v479_v50, %v476_v49  ;;  %v511_v61 = vshll.u32 %v412_v46, 16  ;;  %999 = vrot.lane.b32.xlu1 %v3188_v40, %s3340_s10  ;;  %v499_v0 = vrot.slane %v497_v57, 5  ;;  %v516_v2 = vshrl.u32 %v3569_v52, 16  ;;  %v2842_v51 = vld [vmem:[%s3423_s23 + $0xbc] sm:$0x1] }
  0x36   : > { %v504_v1 = vrot.slane %v502_v58, 4  ;;  %v519_v3 = vshll.u32 %v3569_v52, 16  ;;  %v494_v5 = vor.u32 %v493_v60, %v490_v54  ;;  %v507_v6 = vrot.slane %v505_v26, 5 }
  0x37   : > { %v481_v4 = vrot.slane %v480_v59, 4  ;;  %v513_v7 = vrot.slane %v511_v61, 5  ;;  %v518_v10 = vrot.slane %v516_v2, 4  ;;  %v525_v12 = vshll.u32 %v413_v31, 16  ;;  %v2844_v59 = vld [vmem:[%s3423_s23 + $0xcc] sm:$0x1] }
  0x38   : > { %v521_v11 = vrot.slane %v519_v3, 5  ;;  %v612_v13 = vshrl.u32 %v3576_v62, 16  ;;  %v495_v16 = vrot.slane %v494_v5, 4  ;;  %v508_v17 = vor.u32 %v507_v6, %v504_v1  ;;  %v3616_v61 = vld [vmem:[%s3423_s23 + $0xf8] ss:$8 sps:$4 sm:$0xff]  }
  0x39   : > { %1019 = vrot.lane.b32.xlu0 %v2902_v47, %s3341_s21  ;;  %v486_v15 = vsel %vm3469_vm3, %v481_v4, %v485_v53  ;;  %v615_v18 = vshll.u32 %v3576_v62, 16  ;;  %849 = vrot.lane.b32.xlu1 %v3189_v63, %s3334_s24  ;;  %v527_v22 = vrot.slane %v525_v12, 5  ;;  %v626_v28 = vshrl.u32 %v2826_v8, 16  ;;  %v2843_v53 = vld [vmem:[%s3423_s23 + $0xc4] sm:$0x1] }
  0x3a   : > { %v522_v21 = vor.u32 %v521_v11, %v518_v10  ;;  %v614_v23 = vrot.slane %v612_v13, 4  ;;  %v500_v29 = vsel %vm3469_vm3, %v495_v16, %v499_v0  ;;  %v509_v30 = vrot.slane %v508_v17, 4  ;;  %v3619_v0 = vld [vmem:[%s3423_s23 + $0x28] sm:$0xf]  ;;  %v2850_v5 = vld [vmem:[%s3423_s23 + $0x30] sm:$0xf] }
  0x3b   : > { %v617_v33 = vrot.slane %v615_v18, 5  ;;  %v629_v34 = vshll.u32 %v2826_v8, 16  ;;  %v2879_v35 = vcombine.low %v486_v15, %v500_v29  ;;  %v628_v37 = vrot.slane %v626_v28, 4  ;;  %v3625_v10 = vld [vmem:[%s3423_s23 + $0x38] sm:$0xf] }
  0x3c   : > { %v523_v36 = vrot.slane %v522_v21, 4  ;;  %v2883_v38 = vcombine.low %v3576_v62, %v2826_v8  ;;  %v514_v40 = vsel %vm3469_vm3, %v509_v30, %v513_v7  ;;  %v640_v43 = vshrl.u32 %v3586_v14, 16  ;;  %v3640_v29 = vld [vmem:[%s3423_s23 + $0x108] ss:$8 sps:$4 sm:$0xff]  }
  0x3d   : > { %v631_v41 = vrot.slane %v629_v34, 5  ;;  %v643_v44 = vshll.u32 %v3586_v14, 16  ;;  %851 = vrot.lane.b32.xlu1 %v3190_v9, %s3334_s24  ;;  %869 = vrot.lane.b32.xlu0 %v2879_v35, %s3337_s12  ;;  %v654_v47 = vshrl.u32 %v3593_v20, 16  ;;  %v657_v49 = vshll.u32 %v3593_v20, 16 }
  0x3e   : > { %v528_v46 = vsel %vm3469_vm3, %v523_v36, %v527_v22  ;;  %v2884_v50 = vcombine.low %v3586_v14, %v3593_v20  ;;  %v642_v57 = vrot.slane %v640_v43, 4  ;;  %v618_v58 = vor.u32 %v617_v33, %v614_v23  ;;  %v2852_v20 = vld [vmem:[%s3423_s23 + $0x40] sm:$0xf]  ;;  %v2865_v36 = vld [vmem:[%s3423_s23 + $0x2c] sm:$0x1] }
  0x3f   : > { %v2880_v54 = vcombine.low %v514_v40, %v528_v46  ;;  %v645_v31 = vrot.slane %v643_v44, 5  ;;  %v656_v60 = vrot.slane %v654_v47, 4  ;;  %v659_v26 = vrot.slane %v657_v49, 5  ;;  %v2867_v47 = vld [vmem:[%s3423_s23 + $0x3c] sm:$0x1] }
  0x40   : > { %v621_v62 = vshll.u32 %v2841_v45, 16  ;;  %v632_v63 = vor.u32 %v631_v41, %v628_v37  ;;  %v619_v1 = vrot.slane %v618_v58, 4  ;;  %v635_v2 = vshll.u32 %v2842_v51, 16  ;;  %v2866_v41 = vld [vmem:[%s3423_s23 + $0x34] sm:$0x1] }
  0x41   : > { %v646_v3 = vor.u32 %v645_v31, %v642_v57  ;;  %v649_v4 = vshll.u32 %v2843_v53, 16  ;;  %871 = vrot.lane.b32.xlu1 %v2880_v54, %s3337_s12  ;;  %897 = vrot.lane.b32.xlu0 %v2883_v38, %s3335_s25  ;;  %v660_v8 = vor.u32 %v659_v26, %v656_v60  ;;  %v663_v9 = vshll.u32 %v2844_v59, 16  ;;  %v2868_v54 = vld [vmem:[%s3423_s23 + $0x44] sm:$0x1] }
  0x42   : > { %v623_v6 = vrot.slane %v621_v62, 5  ;;  %v633_v7 = vrot.slane %v632_v63, 4  ;;  %v637_v11 = vrot.slane %v635_v2, 5  ;;  %v750_v14 = vshrl.u32 %v3619_v0, 16 }
  0x43   : > { %v647_v12 = vrot.slane %v646_v3, 4  ;;  %v651_v13 = vrot.slane %v649_v4, 5  ;;  %v661_v16 = vrot.slane %v660_v8, 4  ;;  %v665_v17 = vrot.slane %v663_v9, 5  ;;  %v3197_v4 = vld [vmem:[%s3423_s23 + $0x70] ss:$8 sps:$4 sm:$0xff]  }
  0x44   : > { %v624_v15 = vsel %vm3469_vm3, %v619_v1, %v623_v6  ;;  %v753_v18 = vshll.u32 %v3619_v0, 16  ;;  %v638_v21 = vsel %vm3469_vm3, %v633_v7, %v637_v11  ;;  %v752_v23 = vrot.slane %v750_v14, 4  ;;  %v3206_v9 = vld [vmem:[%s4259_s1 + $0x20] ss:$0 sps:$4 sm:$0xff]  }
  0x45   : > { %v652_v22 = vsel %vm3469_vm3, %v647_v12, %v651_v13  ;;  %v764_v28 = vshrl.u32 %v2850_v5, 16  ;;  %899 = vrot.lane.b32.xlu1 %v2884_v50, %s3335_s25  ;;  %925 = vrot.lane.b32.xlu0 %v3616_v61, %s3336_s26  ;;  %v2891_v30 = vcombine.low %v624_v15, %v638_v21  ;;  %v666_v33 = vsel %vm3469_vm3, %v661_v16, %v665_v17  ;;  %v3198_v16 = vld [vmem:[%s3423_s23 + $0x80] ss:$8 sps:$4 sm:$0xff]  }
  0x46   : > { %v755_v34 = vrot.slane %v753_v18, 5  ;;  %v767_v35 = vshll.u32 %v2850_v5, 16  ;;  %v2892_v37 = vcombine.low %v652_v22, %v666_v33  ;;  %v778_v40 = vshrl.u32 %v3625_v10, 16  ;;  %3156 = vmatprep.subr.msk.bf16.mxu0 %vm1146_vm4, %v3206_v9 }
  0x47   : > { %v766_v38 = vrot.slane %v764_v28, 4  ;;  %v781_v44 = vshll.u32 %v3625_v10, 16  ;;  %v792_v45 = vshrl.u32 %v2852_v20, 16  ;;  %v795_v46 = vshll.u32 %v2852_v20, 16 }
  0x48   : > { %v769_v43 = vrot.slane %v767_v35, 5  ;;  %v2895_v49 = vcombine.low %v3619_v0, %v2850_v5  ;;  %v780_v50 = vrot.slane %v778_v40, 4  ;;  %v756_v51 = vor.u32 %v755_v34, %v752_v23 }
  0x49   : > { %v759_v53 = vshll.u32 %v2865_v36, 16  ;;  %927 = vrot.lane.b32.xlu1 %v3640_v29, %s3336_s26  ;;  %945 = vrot.lane.b32.xlu0 %v2891_v30, %s3338_s17  ;;  %v783_v57 = vrot.slane %v781_v44, 5  ;;  %v794_v31 = vrot.slane %v792_v45, 4  ;;  %v797_v58 = vrot.slane %v795_v46, 5 }
  0x4a   : > { %v770_v59 = vor.u32 %v769_v43, %v766_v38  ;;  %v757_v60 = vrot.slane %v756_v51, 4  ;;  %v773_v62 = vshll.u32 %v2866_v41, 16  ;;  %v787_v63 = vshll.u32 %v2867_v47, 16 }
  0x4b   : > { %v761_v26 = vrot.slane %v759_v53, 5  ;;  %v784_v0 = vor.u32 %v783_v57, %v780_v50  ;;  %v798_v2 = vor.u32 %v797_v58, %v794_v31  ;;  %v801_v3 = vshll.u32 %v2868_v54, 16 }
  0x4c   : > { %v771_v1 = vrot.slane %v770_v59, 4  ;;  %v775_v5 = vrot.slane %v773_v62, 5  ;;  %v2896_v6 = vcombine.low %v3625_v10, %v2852_v20  ;;  %v789_v8 = vrot.slane %v787_v63, 5 }
  0x4d   : > { %947 = vrot.lane.b32.xlu1 %v2892_v37, %s3338_s17  ;;  %973 = vrot.lane.b32.xlu0 %v2895_v49, %s3339_s18  ;;  %v762_v7 = vsel %vm3469_vm3, %v757_v60, %v761_v26  ;;  %v785_v12 = vrot.slane %v784_v0, 4  ;;  %v799_v13 = vrot.slane %v798_v2, 4  ;;  %v803_v14 = vrot.slane %v801_v3, 5 }
  0x4e   : > { %v776_v11 = vsel %vm3469_vm3, %v771_v1, %v775_v5  ;;  %v2871_v15 = vcombine.low %v3540_v25, %v3547_v32  ;;  %v1148_v17 = vsel %vm1146_vm4, %v3206_v9, 0  ;;  %v2872_v18 = vcombine.low %v3559_v39, %v3569_v52 }
  0x4f   : > { %v2903_v10 = vcombine.low %v762_v7, %v776_v11  ;;  %v790_v20 = vsel %vm3469_vm3, %v785_v12, %v789_v8  ;;  %v804_v21 = vsel %vm3469_vm3, %v799_v13, %v803_v14  ;;  %3119 = vmatpush3.bf16.msra.mxu0 %v1148_v17 }
  0x50   : > { %v2904_v22 = vcombine.low %v790_v20, %v804_v21 }
  0x51   : > { %975 = vrot.lane.b32.xlu1 %v2896_v6, %s3339_s18  ;;  %1001 = vrot.lane.b32.xlu0 %v3197_v4, %s3340_s10 }
  0x55   : > { %1003 = vrot.lane.b32.xlu1 %v3198_v16, %s3340_s10  ;;  %1021 = vrot.lane.b32.xlu0 %v2903_v10, %s3341_s21 }
  0x59   : > { %1023 = vrot.lane.b32.xlu1 %v2904_v22, %s3341_s21 }
  0x85   : > { %v846_v23 = vpop.permute.xlu0 %845 }
  0x86   : > { %v1028_v40 = vsel %vm1025_vm2, %v2869_v55, %v846_v23 }
  0x88   : > { %v896_v30 = vpop.permute.xlu1 %895 }
  0x89   : > { %v848_v28 = vpop.permute.xlu0 %847 }
  0x8a   : > { %v1031_v43 = vsel %vm1025_vm2, %v2870_v27, %v848_v28 }
  0x8c   : > { %v924_v34 = vpop.permute.xlu1 %923 }
  0x8d   : > { %v894_v33 = vpop.permute.xlu0 %893 }
  0x91   : > { %v922_v35 = vpop.permute.xlu0 %921 }
  0x97   : > { %v866_v36 = vpop.permute.xlu1 %865 }
  0x98   : > { %v1040_v41 = vsel %vm1038_vm5, %v1028_v40, %v866_v36 }
  0x99   : > { %v1049_v47 = vsel %vm1047_vm6, %v1040_v41, %v894_v33  ;;  %v3342_v33 = vmov 0   ;;  %v1374_v41 = vld [vmem:[#allocation2 + $0x8] sm:$0x1] }
  0x9a   : > { %v1058_v55 = vsel %vm1056_vm7, %v1049_v47, %v922_v35  ;;  %1365 = vst.msk [vmem:[#allocation2] sm:$0x1f] %vm1364_vm13, %v3342_v33  ;;  %1367 = vst.msk [vmem:[#allocation2 + $0x48] sm:$0x1f] %vm1364_vm13, %v3342_v33  ;;  %v1380_v35 = vld [vmem:[#allocation2 + $0x18] sm:$0x1]  ;;  %2621 = vmatprep.subr.bf16.mxu0 %v3342_v33 }
  0x9b   : > { %v942_v37 = vpop.permute.xlu0 %941  ;;  %v868_v38 = vpop.permute.xlu1 %867  ;;  %v1381_v36 = vsel %vm3733_vm0, 0, %v1380_v35  ;;  %v1416_v47 = vld [vmem:[#allocation2 + $0x20] sm:$0x10] }
  0x9c   : > { %v1042_v45 = vsel %vm1038_vm5, %v1031_v43, %v868_v38  ;;  %v1067_v42 = vsel %vm1065_vm8, %v1058_v55, %v942_v37  ;;  %v1413_v38 = vld [vmem:[#allocation2 + $0x18] sm:$0x10]  ;;  %1382 = vst [vmem:[#allocation2 + $0x18] sm:$0x1] %v1381_v36  ;;  %v1407_v43 = vld [vmem:[#allocation2 + $0x8] sm:$0x10] }
  0x9d   : > { %v1051_v19 = vsel %vm1047_vm6, %v1042_v45, %v896_v30  ;;  %v1377_v55 = vld [vmem:[#allocation2 + $0x10] sm:$0x1] }
  0x9e   : > { %v1060_v48 = vsel %vm1056_vm7, %v1051_v19, %v924_v34 }
  0x9f   : > { %v970_v44 = vpop.permute.xlu0 %969  ;;  %v944_v46 = vpop.permute.xlu1 %943 }
  0xa0   : > { %v1076_v27 = vsel %vm1074_vm9, %v1067_v42, %v970_v44  ;;  %v1069_v57 = vsel %vm1065_vm8, %v1060_v48, %v944_v46  ;;  %v1375_v44 = vsel %vm3733_vm0, 0, %v1374_v41  ;;  %v1383_v46 = vld [vmem:[#allocation2 + $0x20] sm:$0x1]  ;;  %v1378_v42 = vsel %vm3733_vm0, 0, %v1377_v55 }
  0xa1   : > { %1376 = vst [vmem:[#allocation2 + $0x8] sm:$0x1] %v1375_v44  ;;  %v1384_v19 = vsel %vm3733_vm0, 0, %v1383_v46  ;;  %1379 = vst [vmem:[#allocation2 + $0x10] sm:$0x1] %v1378_v42 }
  0xa2   : > { %1385 = vst [vmem:[#allocation2 + $0x20] sm:$0x1] %v1384_v19 }
  0xa3   : > { %v998_v24 = vpop.permute.xlu0 %997  ;;  %v972_v49 = vpop.permute.xlu1 %971 }
  0xa4   : > { %v1085_v50 = vsel %vm1083_vm10, %v1076_v27, %v998_v24  ;;  %v1078_v31 = vsel %vm1074_vm9, %v1069_v57, %v972_v49  ;;  %v1410_v49 = vld [vmem:[#allocation2 + $0x10] sm:$0x10]  ;;  %v1404_v27 = vld [vmem:[#allocation2] sm:$0x10]  ;;  %v1425_v57 = vld [vmem:[#allocation2 + $0x38] sm:$0x10] }
  0xa7   : > { %v1018_v51 = vpop.permute.xlu0 %1017  ;;  %v1000_v53 = vpop.permute.xlu1 %999 }
  0xa8   : > { %v1094_v54 = vsel %vm1092_vm11, %v1085_v50, %v1018_v51  ;;  %v1087_v58 = vsel %vm1083_vm10, %v1078_v31, %v1000_v53  ;;  %v1371_v51 = vld [vmem:[#allocation2] sm:$0x1] }
  0xa9   : > { %3120 = vmatprep.mubr.msk.bf16.mxu0 %vm1137_vm12, %v1094_v54  ;;  %v1372_v53 = vsel %vm3733_vm0, 0, %v1371_v51  ;;  %v1392_v54 = vld [vmem:[#allocation2 + $0x38] sm:$0x1] }
  0xaa   : > { %1373 = vst [vmem:[#allocation2] sm:$0x1] %v1372_v53  ;;  %v1393_v31 = vsel %vm3733_vm0, 0, %v1392_v54 }
  0xab   : > { %v1020_v59 = vpop.permute.xlu0 %1019  ;;  %v850_v60 = vpop.permute.xlu1 %849  ;;  %1394 = vst [vmem:[#allocation2 + $0x38] sm:$0x1] %v1393_v31 }
  0xac   : > { %v1096_v26 = vsel %vm1092_vm11, %v1087_v58, %v1020_v59  ;;  %v1034_v8 = vsel %vm1025_vm2, %v2871_v15, %v850_v60  ;;  %v1386_v59 = vld [vmem:[#allocation2 + $0x28] sm:$0x1]  ;;  %v1419_v60 = vld [vmem:[#allocation2 + $0x28] sm:$0x10] }
  0xad   : > { %3121 = vmatmul.mubr.msk.bf16.vlgmr.msra.gmra.mrb[0].mxu0 %vm1137_vm12, %v1096_v26  ;;  %v1387_v26 = vsel %vm3733_vm0, 0, %v1386_v59 }
  0xae   : > { %1388 = vst [vmem:[#allocation2 + $0x28] sm:$0x1] %v1387_v26 }
  0xaf   : > { %v852_v62 = vpop.permute.xlu1 %851  ;;  %v870_v63 = vpop.permute.xlu0 %869 }
  0xb0   : > { %v1044_v9 = vsel %vm1038_vm5, %v1034_v8, %v870_v63  ;;  %v1037_v16 = vsel %vm1025_vm2, %v2872_v18, %v852_v62  ;;  %v1395_v63 = vld [vmem:[#allocation2 + $0x40] sm:$0x1] }
  0xb3   : > { %v872_v1 = vpop.permute.xlu1 %871  ;;  %v898_v0 = vpop.permute.xlu0 %897 }
  0xb4   : > { %v1053_v11 = vsel %vm1047_vm6, %v1044_v9, %v898_v0  ;;  %v1046_v17 = vsel %vm1038_vm5, %v1037_v16, %v872_v1  ;;  %v1428_v1 = vld [vmem:[#allocation2 + $0x40] sm:$0x10]  ;;  %v1396_v0 = vsel %vm3733_vm0, 0, %v1395_v63  ;;  %v3325_v9 = vld [vmem:[%s3423_s23 + $0xe8] ss:$8 sps:$4 sm:$0xff]   ;;  %s3344_s23 = smov 96  }
  0xb5   : > { %1397 = vst [vmem:[#allocation2 + $0x40] sm:$0x1] %v1396_v0  ;;  %v3800_v16 = vld [vmem:[%s4262_s4] ss:$0 sm:$0xff] }
  0xb7   : > { %v900_v2 = vpop.permute.xlu1 %899  ;;  %v926_v3 = vpop.permute.xlu0 %925 }
  0xb8   : > { %v1062_v14 = vsel %vm1056_vm7, %v1053_v11, %v926_v3  ;;  %v1055_v32 = vsel %vm1047_vm6, %v1046_v17, %v900_v2  ;;  %vm1402_vm6 = vsmask.f32 7954  ;;  %v1389_v3 = vld [vmem:[#allocation2 + $0x30] sm:$0x1]  ;;  %v3793_v11 = vld [vmem:[%s4261_s3] ss:$0 sm:$0xff] }
  0xb9   : > { %v1431_v17 = vld [vmem:[#allocation2 + $0x48] sm:$0x10] }
  0xbb   : > { %v928_v4 = vpop.permute.xlu1 %927  ;;  %v946_v5 = vpop.permute.xlu0 %945 }
  0xbc   : > { %v1071_v10 = vsel %vm1065_vm8, %v1062_v14, %v946_v5  ;;  %v1064_v22 = vsel %vm1056_vm7, %v1055_v32, %v928_v4  ;;  %v1422_v4 = vld [vmem:[#allocation2 + $0x30] sm:$0x10]  ;;  %v1390_v5 = vsel %vm3733_vm0, 0, %v1389_v3 }
  0xbd   : > { %1391 = vst [vmem:[#allocation2 + $0x30] sm:$0x1] %v1390_v5 }
  0xbf   : > { %v948_v6 = vpop.permute.xlu1 %947  ;;  %v974_v7 = vpop.permute.xlu0 %973 }
  0xc0   : > { %v1080_v25 = vsel %vm1074_vm9, %v1071_v10, %v974_v7  ;;  %v1073_v39 = vsel %vm1065_vm8, %v1064_v22, %v948_v6  ;;  %vm3740_vm8 = vmand %vm1401_vm1, %vm1402_vm6  ;;  %v1253_v7 = vld [vmem:[%s4260_s2] sm:$0xf] }
  0xc1   : > { %v1414_v40 = vsel %vm3740_vm8, 0, %v1413_v38  ;;  %v1408_v45 = vsel %vm3740_vm8, 0, %v1407_v43  ;;  %v1417_v24 = vsel %vm3740_vm8, 0, %v1416_v47  ;;  %v1411_v48 = vsel %vm3740_vm8, 0, %v1410_v49  ;;  %3157 = vmatprep.subr.msk.bf16.mxu1 %vm1146_vm4, %v1253_v7 }
  0xc2   : > { %1415 = vst [vmem:[#allocation2 + $0x18] sm:$0x10] %v1414_v40  ;;  %1409 = vst [vmem:[#allocation2 + $0x8] sm:$0x10] %v1408_v45  ;;  %v1405_v50 = vsel %vm3740_vm8, 0, %v1404_v27  ;;  %v1426_v58 = vsel %vm3740_vm8, 0, %v1425_v57 }
  0xc3   : > { %v976_v12 = vpop.permute.xlu1 %975  ;;  %v1002_v13 = vpop.permute.xlu0 %1001  ;;  %1418 = vst [vmem:[#allocation2 + $0x20] sm:$0x10] %v1417_v24  ;;  %1412 = vst [vmem:[#allocation2 + $0x10] sm:$0x10] %v1411_v48  ;;  %v1420_v62 = vsel %vm3740_vm8, 0, %v1419_v60  ;;  %v1429_v2 = vsel %vm3740_vm8, 0, %v1428_v1 }
  0xc4   : > { %v1089_v15 = vsel %vm1083_vm10, %v1080_v25, %v1002_v13  ;;  %v1082_v52 = vsel %vm1074_vm9, %v1073_v39, %v976_v12  ;;  %1406 = vst [vmem:[#allocation2] sm:$0x10] %v1405_v50  ;;  %1427 = vst [vmem:[#allocation2 + $0x38] sm:$0x10] %v1426_v58  ;;  %v1423_v6 = vsel %vm3740_vm8, 0, %v1422_v4  ;;  %v1267_v8 = vsel %vm1146_vm4, %v1253_v7, 0 }
  0xc5   : > { %1421 = vst [vmem:[#allocation2 + $0x28] sm:$0x10] %v1420_v62  ;;  %1430 = vst [vmem:[#allocation2 + $0x40] sm:$0x10] %v1429_v2  ;;  %3129 = vmatpush3.bf16.msra.mxu1 %v1267_v8  ;;  %v1398_v12 = vld [vmem:[#allocation2 + $0x48] sm:$0x1] }
  0xc6   : > { %1424 = vst [vmem:[#allocation2 + $0x30] sm:$0x10] %v1423_v6  ;;  %3138 = vmatprep.subr.bf16.mxu1 %v3342_v33  ;;  %v1399_v13 = vsel %vm3733_vm0, 0, %v1398_v12 }
  0xc7   : > { %v1004_v20 = vpop.permute.xlu1 %1003  ;;  %v1022_v21 = vpop.permute.xlu0 %1021  ;;  %1400 = vst [vmem:[#allocation2 + $0x48] sm:$0x1] %v1399_v13 }
  0xc8   : > { %v1098_v23 = vsel %vm1092_vm11, %v1089_v15, %v1022_v21  ;;  %v1091_v18 = vsel %vm1083_vm10, %v1082_v52, %v1004_v20  ;;  %3131 = vmatmul.mubr.msk.bf16.vlgmr.msra.gmra.mrb[0].mxu1 %vm1025_vm2, %v3325_v9  ;;  %v1432_v15 = vsel %vm3740_vm8, 0, %v1431_v17  ;;  %vm1750_vm10 = vcmask 1042432  }
  0xc9   : > { %3124 = vmatprep.mubr.msk.bf16.mxu0 %vm1137_vm12, %v1098_v23  ;;  %3134 = vmatprep.mubr.msk.bf16.mxu1 %vm1025_vm2, %v3616_v61  ;;  %1433 = vst [vmem:[#allocation2 + $0x48] sm:$0x10] %v1432_v15  ;;  %v1516_v45 = vld [vmem:[#allocation2 + $0x18] sm:$0x1f]  ;;  %v1510_v31 = vld [vmem:[#allocation2 + $0x8] sm:$0x1f] }
  0xca   : > { %v1519_v62 = vld [vmem:[#allocation2 + $0x20] sm:$0x1f]  ;;  %v1513_v4 = vld [vmem:[#allocation2 + $0x10] sm:$0x1f] }
  0xcb   : > { %v1024_v28 = vpop.permute.xlu1 %1023  ;;  %v1702_v53 = vld [vmem:[#allocation2] sm:$0x1e] }
  0xcc   : > { %v1100_v30 = vsel %vm1092_vm11, %v1091_v18, %v1024_v28  ;;  %v2938_v5 = vcombine.low %v1702_v53, %v1702_v53  ;;  %v2939_v6 = vcombine.high %v1702_v53, %v1702_v53 }
  0xcd   : > { %3125 = vmatmul.mubr.msk.bf16.gmra.mrb[4].mxu0 %vm1137_vm12, %v1100_v30  ;;  %vm1751_vm12 = vcmask 1046532  }
  0xd0   : > { %3135 = vmatmul.mubr.msk.bf16.gmra.mrb[4].mxu1 %vm1025_vm2, %v3640_v29  ;;  %v1542_v29 = vld [vmem:[#allocation2] sm:$0x1f]  ;;  %vm1508_vm2 = vsmask.f32 4354  ;;  %v3812_v42 = vld [vmem:[#allocation2 + $0x48] sm:$0x1f] }
  0xd1   : > { %v2922_v52 = vcombine.low %v1542_v29, %v1542_v29  ;;  %v2923_v49 = vcombine.high %v1542_v29, %v1542_v29  ;;  %vm3815_vm4 = vmand %vm1364_vm13, %vm1508_vm2  ;;  %v3821_v0 = vcombine.low %v3812_v42, %v3812_v42  ;;  %v3834_v29 = vrot.slane %v2939_v6, 5 }
  0xd2   : > { %vm3836_vm13 = vmor %vm1750_vm10, %vm1751_vm12 }
  0xd3   : > { %v1591_v40 = vshrl.u32 %v2922_v52, 16  ;;  %v1594_v44 = vshll.u32 %v2922_v52, 16  ;;  %v1600_v13 = vshll.u32 %v2923_v49, 16 }
  0xd5   : > { %v1593_v54 = vrot.slane %v1591_v40, 4  ;;  %v1596_v60 = vrot.slane %v1594_v44, 5 }
  0xd7   : > { %v1597_v12 = vor.u32 %v1596_v60, %v1593_v54 }
 0x180   : > { %v3122_v14 = vpop.f32.mrb[0].mxu0 }
 0x181   : > { %v1224_v61 = vmul.f32 %v3122_v14, %v3793_v11  ;;  %v1184_v10 = vpop.f32.mrb[1].mxu0 }
 0x182   : > { %v1222_v25 = vmul.f32 %v3793_v11, %v1184_v10  ;;  %v3123_v32 = vpop.f32.mrb[2].mxu0  ;;  %v3832_v10 = vrot.slane %v2938_v5, 9 }
 0x183   : > { %v1239_v20 = vadd.f32 %v3800_v16, %v1224_v61  ;;  %v1225_v21 = vmul.f32 %v3123_v32, %v3793_v11  ;;  %v1187_v22 = vpop.f32.mrb[3].mxu0  ;;  %v2189_v61 = vshrl.u32 %v3821_v0, 16  ;;  %v1602_v32 = vrot.slane %v1600_v13, 5 }
 0x184   : > { %v1237_v23 = vadd.f32 %v3800_v16, %v1222_v25  ;;  %v1223_v39 = vmul.f32 %v3793_v11, %v1187_v22  ;;  %v1598_v25 = vrot.slane %v1597_v12, 4 }
 0x185   : > { %v1247_v18 = vmax.f32 %v1239_v20, 0.0  ;;  %v1240_v28 = vadd.f32 %v3800_v16, %v1225_v21  ;;  %v3840_v15 = vrot.slane %v2189_v61, 4  ;;  %v2192_v20 = vshll.u32 %v3821_v0, 16  ;;  %v3305_v61 = vld [vmem:[%s4265_s7 + $0x8] sm:$0xff]  }
 0x186   : > { %v1245_v30 = vmax.f32 %v1237_v23, 0.0  ;;  %v1238_v34 = vadd.f32 %v3800_v16, %v1223_v39  ;;  %v1756_v23 = vsel %vm3836_vm13, %v3832_v10, %v3834_v29  ;;  %v3849_v40 = vsel %vm3469_vm3, %v1598_v25, %v1602_v32 }
 0x187   : > { %v1436_v35 = vpack.c.bf16 %v1247_v18, %v1247_v18  ;;  %v1248_v36 = vmax.f32 %v1240_v28, 0.0 }
 0x188   : > { %v1434_v37 = vpack.c.bf16 %v1245_v30, %v1245_v30  ;;  %v1246_v38 = vmax.f32 %v1238_v34, 0.0 }
 0x189   : > { %v1457_v41 = vshrl.u32 %v1436_v35, 16  ;;  %v1437_v43 = vpack.c.bf16 %v1248_v36, %v1248_v36  ;;  %v1460_v24 = vshll.u32 %v1436_v35, 16 }
 0x18a   : > { %v1443_v46 = vshrl.u32 %v1434_v37, 16  ;;  %v1435_v47 = vpack.c.bf16 %v1246_v38, %v1246_v38  ;;  %v1446_v50 = vshll.u32 %v1434_v37, 16 }
 0x18b   : > { %v1459_v19 = vrot.slane %v1457_v41, 7  ;;  %v1464_v55 = vshrl.u32 %v1437_v43, 16  ;;  %v1467_v59 = vshll.u32 %v1437_v43, 16  ;;  %v3017_v41 = vcombine.high %v3812_v42, %v3812_v42 }
 0x18c   : > { %v1445_v27 = vrot.slane %v1443_v46, 7  ;;  %v1450_v51 = vshrl.u32 %v1435_v47, 16  ;;  %v1453_v1 = vshll.u32 %v1435_v47, 16 }
 0x18d   : > { %v1462_v57 = vor.u32 %v1460_v24, %v1459_v19  ;;  %v1466_v58 = vrot.slane %v1464_v55, 7 }
 0x18e   : > { %v1448_v26 = vor.u32 %v1446_v50, %v1445_v27  ;;  %v1452_v63 = vrot.slane %v1450_v51, 7 }
 0x18f   : > { %v1517_v2 = vsel %vm3815_vm4, %v1462_v57, %v1516_v45  ;;  %v1469_v3 = vor.u32 %v1467_v59, %v1466_v58 }
 0x190   : > { %1518 = vst [vmem:[#allocation2 + $0x18] sm:$0x1f] %v1517_v2  ;;  %v1511_v7 = vsel %vm3815_vm4, %v1448_v26, %v1510_v31  ;;  %v1455_v8 = vor.u32 %v1453_v1, %v1452_v63  ;;  %v3304_v26 = vld [vmem:[%s4265_s7] sm:$0xff]  }
 0x191   : > { %1512 = vst [vmem:[#allocation2 + $0x8] sm:$0x1f] %v1511_v7  ;;  %v1520_v9 = vsel %vm3815_vm4, %v1469_v3, %v1519_v62  ;;  %3147 = vmatpush1.bf16.msra.mxu1 %v3304_v26  ;;  %2622 = vmatpush1.bf16.msra.mxu0 %v3304_v26 }
 0x192   : > { %1521 = vst [vmem:[#allocation2 + $0x20] sm:$0x1f] %v1520_v9  ;;  %v1514_v14 = vsel %vm3815_vm4, %v1455_v8, %v1513_v4  ;;  %3139 = vmatprep.subr.bf16.mxu1 %v3342_v33  ;;  %2623 = vmatprep.subr.bf16.mxu0 %v3342_v33 }
 0x193   : > { %1515 = vst [vmem:[#allocation2 + $0x10] sm:$0x1f] %v1514_v14 }
 0x195   : > { %3148 = vmatpush1.bf16.msra.mxu1 %v3305_v61  ;;  %2624 = vmatpush1.bf16.msra.mxu0 %v3305_v61 }
 0x196   : > { %3140 = vmatprep.subr.bf16.mxu1 %v3342_v33  ;;  %2625 = vmatprep.subr.bf16.mxu0 %v3342_v33 }
 0x197   : > { %v1705_v21 = vld [vmem:[#allocation2 + $0x18] sm:$0x1e] }
 0x198   : > { %v2203_v22 = vld [vmem:[#allocation2 + $0x18] sm:$0x1e]  ;;  %v2944_v39 = vcombine.low %v1705_v21, %v1705_v21  ;;  %v2945_v52 = vcombine.high %v1705_v21, %v1705_v21  ;;  %v1703_v30 = vld [vmem:[#allocation2 + $0x8] sm:$0x1e] }
 0x199   : > { %v3020_v18 = vcombine.low %v2203_v22, %v2203_v22  ;;  %v3021_v28 = vcombine.high %v2203_v22, %v2203_v22  ;;  %v1955_v34 = vld [vmem:[#allocation2 + $0x18] sm:$0x1e]  ;;  %v2940_v36 = vcombine.low %v1703_v30, %v1703_v30  ;;  %v2941_v37 = vcombine.high %v1703_v30, %v1703_v30  ;;  %v1956_v38 = vld [vmem:[#allocation2 + $0x20] sm:$0x1e]  ;;  %v1543_v8 = vld [vmem:[#allocation2 + $0x8] sm:$0x1f] }
 0x19a   : > { %v3208_v35 = vld [vmem:[#allocation2 + $0x18] ss:$8 sps:$4 sm:$0xff]   ;;  %v1704_v43 = vld [vmem:[#allocation2 + $0x10] sm:$0x1e]  ;;  %v2982_v44 = vcombine.low %v1955_v34, %v1955_v34  ;;  %v2983_v45 = vcombine.high %v1955_v34, %v1955_v34  ;;  %v2984_v46 = vcombine.low %v1956_v38, %v1956_v38  ;;  %v2985_v47 = vcombine.high %v1956_v38, %v1956_v38 }
 0x19b   : > { %2364 = vrot.lane.b32.xlu0 %v3208_v35, %s3339_s18  ;;  %v2942_v19 = vcombine.low %v1704_v43, %v1704_v43  ;;  %v2943_v24 = vcombine.high %v1704_v43, %v1704_v43  ;;  %v2957_v55 = vrot.slane %v2944_v39, 9  ;;  %v1767_v49 = vrot.slane %v2945_v52, 5  ;;  %v2202_v27 = vld [vmem:[#allocation2 + $0x10] sm:$0x1e]  ;;  %v2204_v3 = vld [vmem:[#allocation2 + $0x20] sm:$0x1e] }
 0x19c   : > { %v3018_v50 = vcombine.low %v2202_v27, %v2202_v27  ;;  %v3019_v51 = vcombine.high %v2202_v27, %v2202_v27  ;;  %v3035_v53 = vrot.slane %v3020_v18, 9  ;;  %v2256_v54 = vrot.slane %v3021_v28, 5  ;;  %v3209_v57 = vld [vmem:[#allocation2 + $0x8] ss:$8 sps:$4 sm:$0xff]  }
 0x19d   : > { %v2956_v31 = vrot.slane %v2942_v19, 9  ;;  %v1763_v58 = vrot.slane %v2943_v24, 5  ;;  %v1768_v59 = vsel %vm3836_vm13, %v2957_v55, %v1767_v49  ;;  %v2955_v60 = vrot.slane %v2940_v36, 9  ;;  %v1544_v49 = vld [vmem:[#allocation2 + $0x10] sm:$0x1f] }
 0x19e   : > { %v3034_v62 = vrot.slane %v3018_v50, 9  ;;  %v2252_v63 = vrot.slane %v3019_v51, 5  ;;  %v2257_v1 = vsel %vm3836_vm13, %v3035_v53, %v2256_v54  ;;  %v1759_v2 = vrot.slane %v2941_v37, 5  ;;  %v3900_v54 = vld [vmem:[#allocation2 + $0x18] sm:$0x1f] }
 0x19f   : > { %2362 = vrot.lane.b32.xlu0 %v3209_v57, %s3339_s18  ;;  %v1764_v4 = vsel %vm3836_vm13, %v2956_v31, %v1763_v58  ;;  %v2996_v5 = vrot.slane %v2982_v44, 9  ;;  %v2011_v6 = vrot.slane %v2983_v45, 5  ;;  %v2997_v7 = vrot.slane %v2984_v46, 9  ;;  %v3306_v46 = vld [vmem:[%s4265_s7 + $0x10] sm:$0xff]  }
 0x1a0   : > { %v3051_v9 = vcombine.low %v1764_v4, %v1768_v59  ;;  %v2253_v12 = vsel %vm3836_vm13, %v3034_v62, %v2252_v63  ;;  %v1760_v13 = vsel %vm3836_vm13, %v2955_v60, %v1759_v2  ;;  %v2015_v14 = vrot.slane %v2985_v47, 5  ;;  %v3126_v10 = vpop.f32.mrb[4].mxu0  ;;  %3149 = vmatpush1.bf16.msra.mxu1 %v3306_v46  ;;  %2626 = vmatpush1.bf16.msra.mxu0 %v3306_v46 }
 0x1a1   : > { %v3074_v29 = vcombine.low %v2253_v12, %v2257_v1  ;;  %v3050_v25 = vcombine.low %v1756_v23, %v1760_v13  ;;  %v2012_v32 = vsel %vm3836_vm13, %v2996_v5, %v2011_v6  ;;  %v3022_v21 = vcombine.low %v2204_v3, %v2204_v3  ;;  %v1200_v39 = vpop.f32.mrb[5].mxu0  ;;  %3141 = vmatprep.subr.bf16.mxu1 %v3342_v33 }
 0x1a2   : > { %v1228_v22 = vmul.f32 %v3126_v10, %v3793_v11  ;;  %2336 = vrot.lane.b32.xlu1 %v3051_v9, %s3336_s26  ;;  %v2016_v52 = vsel %vm3836_vm13, %v2997_v7, %v2015_v14  ;;  %v3023_v18 = vcombine.high %v2204_v3, %v2204_v3  ;;  %v2924_v28 = vcombine.low %v1543_v8, %v1543_v8  ;;  %v3127_v34 = vpop.f32.mrb[6].mxu0 }
 0x1a3   : > { %v1226_v30 = vmul.f32 %v3793_v11, %v1200_v39  ;;  %3087 = vmatprep.mubr.msk.bf16.mxu0 %vm1038_vm5, %v3074_v29  ;;  %2334 = vrot.lane.b32.xlu0 %v3050_v25, %s3336_s26  ;;  %v3063_v23 = vcombine.low %v2012_v32, %v2016_v52  ;;  %v3882_v35 = vrot.slane %v3022_v21, 9  ;;  %v2925_v36 = vcombine.high %v1543_v8, %v1543_v8  ;;  %v1203_v43 = vpop.f32.mrb[7].mxu0  ;;  %v1528_v29 = vld [vmem:[#allocation2 + $0x38] sm:$0x1f] }
 0x1a4   : > { %v1243_v37 = vadd.f32 %v3800_v16, %v1228_v22  ;;  %v1229_v38 = vmul.f32 %v3127_v34, %v3793_v11  ;;  %v3886_v44 = vrot.slane %v3023_v18, 5  ;;  %v1605_v45 = vshrl.u32 %v2924_v28, 16  ;;  %2627 = vmatprep.subr.bf16.mxu0 %v3342_v33  ;;  %v3307_v39 = vld [vmem:[%s4265_s7 + $0x18] sm:$0xff]   ;;  %v1522_v18 = vld [vmem:[#allocation2 + $0x28] sm:$0x1f] }
 0x1a5   : > { %v1241_v47 = vadd.f32 %v3800_v16, %v1226_v30  ;;  %v1227_v19 = vmul.f32 %v3793_v11, %v1203_v43  ;;  %v1608_v24 = vshll.u32 %v2924_v28, 16  ;;  %v1614_v55 = vshll.u32 %v2925_v36, 16  ;;  %v1531_v36 = vld [vmem:[#allocation2 + $0x40] sm:$0x1f]  ;;  %3150 = vmatpush1.bf16.msra.mxu1 %v3307_v39  ;;  %2628 = vmatpush1.bf16.msra.mxu0 %v3307_v39 }
 0x1a6   : > { %v1251_v27 = vmax.f32 %v1243_v37, 0.0  ;;  %v1244_v50 = vadd.f32 %v3800_v16, %v1229_v38  ;;  %v2261_v51 = vsel %vm3836_vm13, %v3882_v35, %v3886_v44  ;;  %v1607_v53 = vrot.slane %v1605_v45, 4  ;;  %3142 = vmatprep.subr.bf16.mxu1 %v3342_v33  ;;  %2629 = vmatprep.subr.bf16.mxu0 %v3342_v33  ;;  %v3945_v39 = vld [vmem:[#allocation2 + $0x20] sm:$0x1f] }
 0x1a7   : > { %v1249_v57 = vmax.f32 %v1241_v47, 0.0  ;;  %v1242_v11 = vadd.f32 %v3800_v16, %v1227_v19  ;;  %2404 = vrot.lane.b32.xlu0 %v3063_v23, %s3343_s22  ;;  %v1610_v31 = vrot.slane %v1608_v24, 5  ;;  %v1616_v58 = vrot.slane %v1614_v55, 5  ;;  %v1525_v47 = vld [vmem:[#allocation2 + $0x30] sm:$0x1f] }
 0x1a8   : > { %v1440_v59 = vpack.c.bf16 %v1251_v27, %v1251_v27  ;;  %v1252_v60 = vmax.f32 %v1244_v50, 0.0  ;;  %v2926_v26 = vcombine.low %v1544_v49, %v1544_v49  ;;  %v2927_v62 = vcombine.high %v1544_v49, %v1544_v49  ;;  %v1795_v55 = vld [vmem:[#allocation2 + $0x18] sm:$0x1f] }
 0x1a9   : > { %v1438_v63 = vpack.c.bf16 %v1249_v57, %v1249_v57  ;;  %v1250_v1 = vmax.f32 %v1242_v11, 0.0  ;;  %v1611_v2 = vor.u32 %v1610_v31, %v1607_v53  ;;  %v2928_v3 = vcombine.low %v3900_v54, %v3900_v54  ;;  %v3308_v57 = vld [vmem:[%s4265_s7 + $0x20] sm:$0xff]  }
 0x1aa   : > { %v1485_v16 = vshrl.u32 %v1440_v59, 16  ;;  %v1488_v4 = vshll.u32 %v1440_v59, 16  ;;  %v1441_v5 = vpack.c.bf16 %v1252_v60, %v1252_v60  ;;  %v2929_v6 = vcombine.high %v3900_v54, %v3900_v54  ;;  %v1796_v54 = vld [vmem:[#allocation2 + $0x20] sm:$0x1f]  ;;  %3151 = vmatpush1.bf16.msra.mxu1 %v3308_v57  ;;  %2630 = vmatpush1.bf16.msra.mxu0 %v3308_v57 }
 0x1ab   : > { %v1471_v7 = vshrl.u32 %v1438_v63, 16  ;;  %v1474_v8 = vshll.u32 %v1438_v63, 16  ;;  %v1439_v9 = vpack.c.bf16 %v1250_v1, %v1250_v1  ;;  %v1612_v12 = vrot.slane %v1611_v2, 4  ;;  %3143 = vmatprep.subr.bf16.mxu1 %v3342_v33  ;;  %2631 = vmatprep.subr.bf16.mxu0 %v3342_v33 }
 0x1ac   : > { %v1487_v13 = vrot.slane %v1485_v16, 7  ;;  %v1492_v14 = vshrl.u32 %v1441_v5, 16  ;;  %v1495_v61 = vshll.u32 %v1441_v5, 16  ;;  %v1619_v10 = vshrl.u32 %v2926_v26, 16  ;;  %v3932_v5 = vld [vmem:[#allocation2 + $0x8] sm:$0x1f] }
 0x1ad   : > { %v1473_v25 = vrot.slane %v1471_v7, 7  ;;  %v1478_v32 = vshrl.u32 %v1439_v9, 16  ;;  %v1481_v21 = vshll.u32 %v1439_v9, 16  ;;  %v3912_v22 = vsel %vm3469_vm3, %v1612_v12, %v1616_v58  ;;  %v3310_v9 = vld [vmem:[%s4265_s7 + $0x28] sm:$0xff]  }
 0x1ae   : > { %v1490_v52 = vor.u32 %v1488_v4, %v1487_v13  ;;  %v1494_v28 = vrot.slane %v1492_v14, 7  ;;  %v3046_v30 = vcombine.low %v3849_v40, %v3912_v22  ;;  %v1621_v34 = vrot.slane %v1619_v10, 4  ;;  %v1706_v4 = vld [vmem:[#allocation2 + $0x20] sm:$0x1e]  ;;  %v3939_v10 = vld [vmem:[#allocation2 + $0x10] sm:$0x1f]  ;;  %3152 = vmatpush1.bf16.msra.mxu1 %v3310_v9  ;;  %2632 = vmatpush1.bf16.msra.mxu0 %v3310_v9 }
 0x1af   : > { %v1476_v23 = vor.u32 %v1474_v8, %v1473_v25  ;;  %v1480_v37 = vrot.slane %v1478_v32, 7  ;;  %v1622_v38 = vshll.u32 %v2926_v26, 16  ;;  %v1628_v43 = vshll.u32 %v2927_v62, 16  ;;  %3144 = vmatprep.subr.bf16.mxu1 %v3342_v33  ;;  %2633 = vmatprep.subr.bf16.mxu0 %v3342_v33 }
 0x1b0   : > { %v1529_v45 = vsel %vm3815_vm4, %v1490_v52, %v1528_v29  ;;  %v1497_v46 = vor.u32 %v1495_v61, %v1494_v28  ;;  %v1633_v19 = vshrl.u32 %v2928_v3, 16  ;;  %v1636_v24 = vshll.u32 %v2928_v3, 16 }
 0x1b1   : > { %1530 = vst [vmem:[#allocation2 + $0x38] sm:$0x1f] %v1529_v45  ;;  %v1523_v49 = vsel %vm3815_vm4, %v1476_v23, %v1522_v18  ;;  %v1483_v27 = vor.u32 %v1481_v21, %v1480_v37  ;;  %v1624_v50 = vrot.slane %v1622_v38, 5  ;;  %v1630_v53 = vrot.slane %v1628_v43, 5 }
 0x1b2   : > { %1524 = vst [vmem:[#allocation2 + $0x28] sm:$0x1f] %v1523_v49  ;;  %v1532_v11 = vsel %vm3815_vm4, %v1497_v46, %v1531_v36  ;;  %v1635_v31 = vrot.slane %v1633_v19, 4  ;;  %v1638_v58 = vrot.slane %v1636_v24, 5  ;;  %v1642_v59 = vshll.u32 %v2929_v6, 16 }
 0x1b3   : > { %1533 = vst [vmem:[#allocation2 + $0x40] sm:$0x1f] %v1532_v11  ;;  %v1526_v60 = vsel %vm3815_vm4, %v1483_v27, %v1525_v47  ;;  %v1625_v26 = vor.u32 %v1624_v50, %v1621_v34  ;;  %v2966_v62 = vcombine.low %v1795_v55, %v1795_v55  ;;  %v2967_v63 = vcombine.high %v1795_v55, %v1795_v55 }
 0x1b4   : > { %1527 = vst [vmem:[#allocation2 + $0x30] sm:$0x1f] %v1526_v60  ;;  %v1639_v1 = vor.u32 %v1638_v58, %v1635_v31  ;;  %v1644_v2 = vrot.slane %v1642_v59, 5  ;;  %v2968_v3 = vcombine.low %v1796_v54, %v1796_v54  ;;  %v2969_v16 = vcombine.high %v1796_v54, %v1796_v54 }
 0x1b5   : > { %v1626_v6 = vrot.slane %v1625_v26, 4  ;;  %v1870_v7 = vshrl.u32 %v2966_v62, 16  ;;  %v1873_v8 = vshll.u32 %v2966_v62, 16  ;;  %v1879_v48 = vshll.u32 %v2967_v63, 16 }
 0x1b6   : > { %v1640_v12 = vrot.slane %v1639_v1, 4  ;;  %v1884_v13 = vshrl.u32 %v2968_v3, 16  ;;  %v1887_v14 = vshll.u32 %v2968_v3, 16  ;;  %v1893_v61 = vshll.u32 %v2969_v16, 16 }
 0x1b7   : > { %v3943_v29 = vsel %vm3469_vm3, %v1626_v6, %v1630_v53  ;;  %v1872_v25 = vrot.slane %v1870_v7, 4  ;;  %v1875_v32 = vrot.slane %v1873_v8, 5  ;;  %v1881_v21 = vrot.slane %v1879_v48, 5 }
 0x1b8   : > { %v3949_v52 = vsel %vm3469_vm3, %v1640_v12, %v1644_v2  ;;  %v1886_v18 = vrot.slane %v1884_v13, 4  ;;  %v1889_v28 = vrot.slane %v1887_v14, 5  ;;  %v2946_v34 = vcombine.low %v1706_v4, %v1706_v4 }
 0x1b9   : > { %v3226_v23 = vld [vmem:[#allocation2 + $0x20] ss:$8 sps:$4 sm:$0xff]   ;;  %v3047_v37 = vcombine.low %v3943_v29, %v3949_v52  ;;  %v1876_v38 = vor.u32 %v1875_v32, %v1872_v25  ;;  %v2947_v43 = vcombine.high %v1706_v4, %v1706_v4  ;;  %v2962_v45 = vcombine.low %v3932_v5, %v3932_v5 }
 0x1ba   : > { %v2205_v36 = vld [vmem:[#allocation2 + $0x28] sm:$0x1e]  ;;  %v1890_v19 = vor.u32 %v1889_v28, %v1886_v18  ;;  %v2963_v24 = vcombine.high %v3932_v5, %v3932_v5  ;;  %2432 = vrot.lane.b32.xlu1 %v3226_v23, %s3344_s23  ;;  %v3962_v49 = vcombine.low %v3939_v10, %v3939_v10  ;;  %v2965_v27 = vcombine.high %v3939_v10, %v3939_v10  ;;  %v3228_v54 = vld [vmem:[#allocation2 + $0x38] ss:$8 sps:$4 sm:$0xff]  }
 0x1bb   : > { %v3024_v46 = vcombine.low %v2205_v36, %v2205_v36  ;;  %v3025_v47 = vcombine.high %v2205_v36, %v2205_v36  ;;  %v3227_v55 = vld [vmem:[#allocation2 + $0x30] ss:$8 sps:$4 sm:$0xff]   ;;  %v3968_v50 = vcombine.low %v3945_v39, %v3945_v39  ;;  %v3007_v53 = vcombine.high %v3945_v39, %v3945_v39  ;;  %v1707_v60 = vld [vmem:[#allocation2 + $0x28] sm:$0x1e] }
 0x1bc   : > { %v1877_v31 = vrot.slane %v1876_v38, 4  ;;  %v1891_v58 = vrot.slane %v1890_v19, 4  ;;  %2434 = vrot.lane.b32.xlu0 %v3227_v55, %s3344_s23  ;;  %v1895_v59 = vrot.slane %v1893_v61, 5  ;;  %v2958_v26 = vrot.slane %v2946_v34, 9  ;;  %v1957_v4 = vld [vmem:[#allocation2 + $0x28] sm:$0x1e] }
 0x1bd   : > { %v3037_v57 = vrot.slane %v3024_v46, 9  ;;  %v2264_v11 = vrot.slane %v3025_v47, 5  ;;  %v1771_v62 = vrot.slane %v2947_v43, 5  ;;  %v1842_v63 = vshrl.u32 %v2962_v45, 16  ;;  %v1958_v5 = vld [vmem:[#allocation2 + $0x30] sm:$0x1e] }
 0x1be   : > { %v1882_v2 = vsel %vm3469_vm3, %v1877_v31, %v1881_v21  ;;  %v2948_v3 = vcombine.low %v1707_v60, %v1707_v60  ;;  %v2949_v16 = vcombine.high %v1707_v60, %v1707_v60  ;;  %2368 = vrot.lane.b32.xlu1 %v3228_v54, %s3339_s18  ;;  %v1896_v7 = vsel %vm3469_vm3, %v1891_v58, %v1895_v59  ;;  %v3237_v35 = vld [vmem:[#allocation2 + $0x28] ss:$8 sps:$4 sm:$0xff]   ;;  %v1709_v46 = vld [vmem:[#allocation2 + $0x38] sm:$0x1e] }
 0x1bf   : > { %v2265_v1 = vsel %vm3836_vm13, %v3037_v57, %v2264_v11  ;;  %v1772_v8 = vsel %vm3836_vm13, %v2958_v26, %v1771_v62  ;;  %v2986_v48 = vcombine.low %v1957_v4, %v1957_v4  ;;  %v3059_v9 = vcombine.low %v1882_v2, %v1896_v7  ;;  %v1708_v28 = vld [vmem:[#allocation2 + $0x30] sm:$0x1e]  ;;  %v3313_v47 = vld [vmem:[%s4265_s7 + $0x38] sm:$0xff]   ;;  %v2045_v57 = vld [vmem:[#allocation2 + $0x28] sm:$0x1f] }
 0x1c0   : > { %v3075_v6 = vcombine.low %v2261_v51, %v2265_v1  ;;  %v2959_v12 = vrot.slane %v2948_v3, 9  ;;  %v1775_v13 = vrot.slane %v2949_v16, 5  ;;  %v2987_v14 = vcombine.high %v1957_v4, %v1957_v4  ;;  %2314 = vrot.lane.b32.xlu0 %v3046_v30, %s3337_s12  ;;  %v3312_v34 = vld [vmem:[%s4265_s7 + $0x30] sm:$0xff]  }
 0x1c1   : > { %v2988_v44 = vcombine.low %v1958_v5, %v1958_v5  ;;  %v2989_v51 = vcombine.high %v1958_v5, %v1958_v5  ;;  %v2998_v61 = vrot.slane %v2986_v48, 9  ;;  %v1844_v10 = vrot.slane %v1842_v63, 4  ;;  %3153 = vmatpush1.bf16.msra.mxu1 %v3312_v34  ;;  %2634 = vmatpush1.bf16.msra.mxu0 %v3312_v34  ;;  %v3314_v63 = vld [vmem:[%s4265_s7 + $0x40] sm:$0xff]   ;;  %v1547_v48 = vld [vmem:[#allocation2 + $0x28] sm:$0x1f] }
 0x1c2   : > { %3088 = vmatprep.mubr.msk.bf16.mxu1 %vm1038_vm5, %v3075_v6  ;;  %v1776_v25 = vsel %vm3836_vm13, %v2959_v12, %v1775_v13  ;;  %v2019_v32 = vrot.slane %v2987_v14, 5  ;;  %v1845_v21 = vshll.u32 %v2962_v45, 16  ;;  %v1851_v18 = vshll.u32 %v2963_v24, 16  ;;  %2366 = vrot.lane.b32.xlu1 %v3237_v35, %s3339_s18 }
 0x1c3   : > { %v3052_v40 = vcombine.low %v1772_v8, %v1776_v25  ;;  %v2999_v22 = vrot.slane %v2988_v44, 9  ;;  %v2023_v30 = vrot.slane %v2989_v51, 5  ;;  %v1856_v23 = vshrl.u32 %v3962_v49, 16  ;;  %3145 = vmatprep.subr.bf16.mxu1 %v3342_v33  ;;  %2635 = vmatprep.subr.bf16.mxu0 %v3342_v33  ;;  %v1546_v8 = vld [vmem:[#allocation2 + $0x20] sm:$0x1f] }
 0x1c4   : > { %v2020_v36 = vsel %vm3836_vm13, %v2998_v61, %v2019_v32  ;;  %v1847_v38 = vrot.slane %v1845_v21, 5  ;;  %v1853_v43 = vrot.slane %v1851_v18, 5  ;;  %v1859_v45 = vshll.u32 %v3962_v49, 16  ;;  %2316 = vrot.lane.b32.xlu0 %v3047_v37, %s3337_s12  ;;  %v1797_v61 = vld [vmem:[#allocation2 + $0x28] sm:$0x1f] }
 0x1c5   : > { %v2024_v19 = vsel %vm3836_vm13, %v2999_v22, %v2023_v30  ;;  %v1858_v24 = vrot.slane %v1856_v23, 4  ;;  %v1865_v55 = vshll.u32 %v2965_v27, 16  ;;  %v2950_v54 = vcombine.low %v1708_v28, %v1708_v28  ;;  %3154 = vmatpush1.bf16.msra.mxu1 %v3313_v47  ;;  %2636 = vmatpush1.bf16.msra.mxu0 %v3313_v47 }
 0x1c6   : > { %v3064_v49 = vcombine.low %v2020_v36, %v2024_v19  ;;  %v1848_v11 = vor.u32 %v1847_v38, %v1844_v10  ;;  %v1861_v31 = vrot.slane %v1859_v45, 5  ;;  %v2951_v58 = vcombine.high %v1708_v28, %v1708_v28  ;;  %2384 = vrot.lane.b32.xlu1 %v3059_v9, %s3341_s21  ;;  %3146 = vmatprep.subr.bf16.mxu1 %v3342_v33  ;;  %v1798_v19 = vld [vmem:[#allocation2 + $0x30] sm:$0x1f] }
 0x1c7   : > { %v1867_v59 = vrot.slane %v1865_v55, 5  ;;  %v2952_v29 = vcombine.low %v1709_v46, %v1709_v46  ;;  %v2953_v52 = vcombine.high %v1709_v46, %v1709_v46  ;;  %v2960_v37 = vrot.slane %v2950_v54, 9  ;;  %2637 = vmatprep.subr.bf16.mxu0 %v3342_v33 }
 0x1c8   : > { %v1849_v60 = vrot.slane %v1848_v11, 4  ;;  %v1862_v26 = vor.u32 %v1861_v31, %v1858_v24  ;;  %v1779_v62 = vrot.slane %v2951_v58, 5  ;;  %v3008_v27 = vcombine.low %v2045_v57, %v2045_v57  ;;  %2338 = vrot.lane.b32.xlu0 %v3052_v40, %s3336_s26 }
 0x1c9   : > { %v2961_v1 = vrot.slane %v2952_v29, 9  ;;  %v1783_v2 = vrot.slane %v2953_v52, 5  ;;  %v3009_v3 = vcombine.high %v2045_v57, %v2045_v57  ;;  %v2119_v16 = vshrl.u32 %v3968_v50, 16  ;;  %3155 = vmatpush1.bf16.msra.mxu1 %v3314_v63  ;;  %2638 = vmatpush1.bf16.msra.mxu0 %v3314_v63 }
 0x1ca   : > { %v1854_v4 = vsel %vm3469_vm3, %v1849_v60, %v1853_v43  ;;  %v1863_v5 = vrot.slane %v1862_v26, 4  ;;  %v1780_v6 = vsel %vm3836_vm13, %v2960_v37, %v1779_v62  ;;  %v2122_v7 = vshll.u32 %v3968_v50, 16  ;;  %2406 = vrot.lane.b32.xlu1 %v3064_v49, %s3343_s22 }
 0x1cb   : > { %v1784_v9 = vsel %vm3836_vm13, %v2961_v1, %v1783_v2  ;;  %v2121_v12 = vrot.slane %v2119_v16, 4  ;;  %v2128_v13 = vshll.u32 %v3007_v53, 16  ;;  %v2133_v14 = vshrl.u32 %v3008_v27, 16  ;;  %v1799_v16 = vld [vmem:[#allocation2 + $0x38] sm:$0x1f] }
 0x1cc   : > { %v1868_v35 = vsel %vm3469_vm3, %v1863_v5, %v1867_v59  ;;  %v3053_v44 = vcombine.low %v1780_v6, %v1784_v9  ;;  %v2124_v50 = vrot.slane %v2122_v7, 5  ;;  %v2136_v51 = vshll.u32 %v3008_v27, 16 }
 0x1cd   : > { %v3058_v33 = vcombine.low %v1854_v4, %v1868_v35  ;;  %v2130_v10 = vrot.slane %v2128_v13, 5  ;;  %v2135_v25 = vrot.slane %v2133_v14, 4  ;;  %v2142_v32 = vshll.u32 %v3009_v3, 16 }
 0x1ce   : > { %v2125_v21 = vor.u32 %v2124_v50, %v2121_v12  ;;  %v2138_v18 = vrot.slane %v2136_v51, 5  ;;  %v2930_v28 = vcombine.low %v1546_v8, %v1546_v8  ;;  %v2931_v34 = vcombine.high %v1546_v8, %v1546_v8  ;;  %2340 = vrot.lane.b32.xlu1 %v3053_v44, %s3336_s26  ;;  %s3345_s26 = smov 112   ;;  %v1800_v8 = vld [vmem:[#allocation2 + $0x40] sm:$0x1f] }
 0x1cf   : > { %2382 = vrot.lane.b32.xlu0 %v3058_v33, %s3341_s21  ;;  %v2144_v39 = vrot.slane %v2142_v32, 5  ;;  %v2932_v53 = vcombine.low %v1547_v48, %v1547_v48  ;;  %v2933_v40 = vcombine.high %v1547_v48, %v1547_v48  ;;  %v2970_v22 = vcombine.low %v1797_v61, %v1797_v61 }
 0x1d0   : > { %v2126_v30 = vrot.slane %v2125_v21, 4  ;;  %v2139_v23 = vor.u32 %v2138_v18, %v2135_v25  ;;  %v1647_v36 = vshrl.u32 %v2930_v28, 16  ;;  %v1650_v38 = vshll.u32 %v2930_v28, 16 }
 0x1d1   : > { %v1656_v43 = vshll.u32 %v2931_v34, 16  ;;  %v1661_v45 = vshrl.u32 %v2932_v53, 16  ;;  %v1664_v46 = vshll.u32 %v2932_v53, 16  ;;  %v1670_v47 = vshll.u32 %v2933_v40, 16  ;;  %v1953_v40 = vld [vmem:[#allocation2 + $0x8] sm:$0x1e] }
 0x1d2   : > { %v2131_v24 = vsel %vm3469_vm3, %v2126_v30, %v2130_v10  ;;  %v2140_v55 = vrot.slane %v2139_v23, 4  ;;  %v1649_v54 = vrot.slane %v1647_v36, 4  ;;  %v1652_v57 = vrot.slane %v1650_v38, 5  ;;  %v1954_v38 = vld [vmem:[#allocation2 + $0x10] sm:$0x1e] }
 0x1d3   : > { %v1658_v49 = vrot.slane %v1656_v43, 5  ;;  %v1663_v11 = vrot.slane %v1661_v45, 4  ;;  %v1666_v31 = vrot.slane %v1664_v46, 5  ;;  %v1672_v58 = vrot.slane %v1670_v47, 5 }
 0x1d4   : > { %v2145_v59 = vsel %vm3469_vm3, %v2140_v55, %v2144_v39  ;;  %v1653_v29 = vor.u32 %v1652_v57, %v1649_v54  ;;  %v2971_v52 = vcombine.high %v1797_v61, %v1797_v61  ;;  %v2972_v37 = vcombine.low %v1798_v19, %v1798_v19 }
 0x1d5   : > { %v3071_v60 = vcombine.low %v2131_v24, %v2145_v59  ;;  %v1667_v26 = vor.u32 %v1666_v31, %v1663_v11  ;;  %v2973_v62 = vcombine.high %v1798_v19, %v1798_v19  ;;  %v1898_v27 = vshrl.u32 %v2970_v22, 16  ;;  %v1959_v19 = vld [vmem:[#allocation2 + $0x38] sm:$0x1e]  ;;  %v1960_v59 = vld [vmem:[#allocation2 + $0x40] sm:$0x1e] }
 0x1d6   : > { %v1654_v63 = vrot.slane %v1653_v29, 4  ;;  %v1901_v1 = vshll.u32 %v2970_v22, 16  ;;  %v1907_v2 = vshll.u32 %v2971_v52, 16  ;;  %v1912_v3 = vshrl.u32 %v2972_v37, 16 }
 0x1d7   : > { %2452 = vrot.lane.b32.xlu0 %v3071_v60, %s3345_s26  ;;  %v1668_v4 = vrot.slane %v1667_v26, 4  ;;  %v1900_v5 = vrot.slane %v1898_v27, 4  ;;  %v1915_v6 = vshll.u32 %v2972_v37, 16  ;;  %v1921_v7 = vshll.u32 %v2973_v62, 16 }
 0x1d8   : > { %v1659_v48 = vsel %vm3469_vm3, %v1654_v63, %v1658_v49  ;;  %v1903_v9 = vrot.slane %v1901_v1, 5  ;;  %v1909_v12 = vrot.slane %v1907_v2, 5  ;;  %v1914_v13 = vrot.slane %v1912_v3, 4 }
 0x1d9   : > { %v1673_v14 = vsel %vm3469_vm3, %v1668_v4, %v1672_v58  ;;  %v1917_v35 = vrot.slane %v1915_v6, 5  ;;  %v1923_v44 = vrot.slane %v1921_v7, 5  ;;  %v2974_v50 = vcombine.low %v1799_v16, %v1799_v16  ;;  %v2046_v4 = vld [vmem:[#allocation2 + $0x30] sm:$0x1f] }
 0x1da   : > { %v3048_v51 = vcombine.low %v1659_v48, %v1673_v14  ;;  %v1904_v61 = vor.u32 %v1903_v9, %v1900_v5  ;;  %v2975_v33 = vcombine.high %v1799_v16, %v1799_v16  ;;  %v2976_v10 = vcombine.low %v1800_v8, %v1800_v8  ;;  %v2047_v48 = vld [vmem:[#allocation2 + $0x38] sm:$0x1f]  ;;  %v2042_v9 = vld [vmem:[#allocation2 + $0x10] sm:$0x1f] }
 0x1db   : > { %v1918_v25 = vor.u32 %v1917_v35, %v1914_v13  ;;  %v2977_v32 = vcombine.high %v1800_v8, %v1800_v8  ;;  %v1926_v21 = vshrl.u32 %v2974_v50, 16  ;;  %v1929_v18 = vshll.u32 %v2974_v50, 16 }
 0x1dc   : > { %2318 = vrot.lane.b32.xlu1 %v3048_v51, %s3337_s12  ;;  %v1905_v28 = vrot.slane %v1904_v61, 4  ;;  %v1935_v34 = vshll.u32 %v2975_v33, 16  ;;  %v1940_v39 = vshrl.u32 %v2976_v10, 16  ;;  %v1943_v53 = vshll.u32 %v2976_v10, 16 }
 0x1dd   : > { %v1919_v22 = vrot.slane %v1918_v25, 4  ;;  %v1928_v30 = vrot.slane %v1926_v21, 4  ;;  %v1931_v23 = vrot.slane %v1929_v18, 5  ;;  %v1949_v36 = vshll.u32 %v2977_v32, 16  ;;  %v2043_v32 = vld [vmem:[#allocation2 + $0x18] sm:$0x1f] }
 0x1de   : > { %v1910_v43 = vsel %vm3469_vm3, %v1905_v28, %v1909_v12  ;;  %v1937_v45 = vrot.slane %v1935_v34, 5  ;;  %v1942_v46 = vrot.slane %v1940_v39, 4  ;;  %v1945_v47 = vrot.slane %v1943_v53, 5 }
 0x1df   : > { %v1924_v24 = vsel %vm3469_vm3, %v1919_v22, %v1923_v44  ;;  %v1932_v55 = vor.u32 %v1931_v23, %v1928_v30  ;;  %v1951_v54 = vrot.slane %v1949_v36, 5  ;;  %v2978_v57 = vcombine.low %v1953_v40, %v1953_v40  ;;  %v3286_v23 = vld [vmem:[#allocation2 + $0x10] ss:$8 sps:$4 sm:$0xff]  }
 0x1e0   : > { %v3060_v49 = vcombine.low %v1910_v43, %v1924_v24  ;;  %v1946_v11 = vor.u32 %v1945_v47, %v1942_v46  ;;  %v2979_v31 = vcombine.high %v1953_v40, %v1953_v40  ;;  %v2980_v58 = vcombine.low %v1954_v38, %v1954_v38 }
 0x1e1   : > { %v1933_v29 = vrot.slane %v1932_v55, 4  ;;  %v2981_v52 = vcombine.high %v1954_v38, %v1954_v38  ;;  %v2994_v37 = vrot.slane %v2978_v57, 9  ;;  %v2990_v60 = vcombine.low %v1959_v19, %v1959_v19 }
 0x1e2   : > { %2386 = vrot.lane.b32.xlu0 %v3060_v49, %s3341_s21  ;;  %v1947_v26 = vrot.slane %v1946_v11, 4  ;;  %v2003_v62 = vrot.slane %v2979_v31, 5  ;;  %v2995_v27 = vrot.slane %v2980_v58, 9  ;;  %v2991_v63 = vcombine.high %v1959_v19, %v1959_v19 }
 0x1e3   : > { %v1938_v1 = vsel %vm3469_vm3, %v1933_v29, %v1937_v45  ;;  %v2007_v2 = vrot.slane %v2981_v52, 5  ;;  %v2992_v3 = vcombine.low %v1960_v59, %v1960_v59  ;;  %v2993_v16 = vcombine.high %v1960_v59, %v1960_v59  ;;  %v1548_v29 = vld [vmem:[#allocation2 + $0x30] sm:$0x1f] }
 0x1e4   : > { %v1952_v5 = vsel %vm3469_vm3, %v1947_v26, %v1951_v54  ;;  %v2004_v6 = vsel %vm3836_vm13, %v2994_v37, %v2003_v62  ;;  %v3000_v7 = vrot.slane %v2990_v60, 9  ;;  %v2027_v8 = vrot.slane %v2991_v63, 5  ;;  %v1549_v60 = vld [vmem:[#allocation2 + $0x38] sm:$0x1f] }
 0x1e5   : > { %v3061_v12 = vcombine.low %v1938_v1, %v1952_v5  ;;  %v2008_v13 = vsel %vm3836_vm13, %v2995_v27, %v2007_v2  ;;  %v3001_v14 = vrot.slane %v2992_v3, 9  ;;  %v2031_v35 = vrot.slane %v2993_v16, 5 }
 0x1e6   : > { %v3062_v44 = vcombine.low %v2004_v6, %v2008_v13  ;;  %v2028_v50 = vsel %vm3836_vm13, %v3000_v7, %v2027_v8  ;;  %v3010_v51 = vcombine.low %v2046_v4, %v2046_v4  ;;  %v3011_v61 = vcombine.high %v2046_v4, %v2046_v4 }
 0x1e7   : > { %2388 = vrot.lane.b32.xlu1 %v3061_v12, %s3341_s21  ;;  %v2032_v33 = vsel %vm3836_vm13, %v3001_v14, %v2031_v35  ;;  %v3012_v10 = vcombine.low %v2047_v48, %v2047_v48  ;;  %v3013_v25 = vcombine.high %v2047_v48, %v2047_v48  ;;  %v3002_v21 = vcombine.low %v2042_v9, %v2042_v9 }
 0x1e8   : > { %2402 = vrot.lane.b32.xlu0 %v3062_v44, %s3343_s22  ;;  %v3065_v18 = vcombine.low %v2028_v50, %v2032_v33  ;;  %v2147_v28 = vshrl.u32 %v3010_v51, 16  ;;  %v2150_v34 = vshll.u32 %v3010_v51, 16  ;;  %v2156_v39 = vshll.u32 %v3011_v61, 16  ;;  %v2048_v50 = vld [vmem:[#allocation2 + $0x40] sm:$0x1f] }
 0x1e9   : > { %v2161_v53 = vshrl.u32 %v3012_v10, 16  ;;  %v2164_v40 = vshll.u32 %v3012_v10, 16  ;;  %v2170_v22 = vshll.u32 %v3013_v25, 16  ;;  %v3003_v30 = vcombine.high %v2042_v9, %v2042_v9 }
 0x1ea   : > { %v2149_v36 = vrot.slane %v2147_v28, 4  ;;  %v2152_v38 = vrot.slane %v2150_v34, 5  ;;  %v3004_v43 = vcombine.low %v2043_v32, %v2043_v32  ;;  %v4067_v45 = vrot.slane %v2192_v20, 5 }
 0x1eb   : > { %2408 = vrot.lane.b32.xlu1 %v3065_v18, %s3343_s22  ;;  %v2158_v46 = vrot.slane %v2156_v39, 5  ;;  %v2163_v47 = vrot.slane %v2161_v53, 4  ;;  %v2166_v19 = vrot.slane %v2164_v40, 5  ;;  %v3005_v24 = vcombine.high %v2043_v32, %v2043_v32 }
 0x1ec   : > { %2430 = vrot.lane.b32.xlu0 %v3286_v23, %s3344_s23  ;;  %v2153_v55 = vor.u32 %v2152_v38, %v2149_v36  ;;  %v2091_v54 = vshrl.u32 %v3002_v21, 16  ;;  %v2094_v57 = vshll.u32 %v3002_v21, 16  ;;  %v2100_v49 = vshll.u32 %v3003_v30, 16 }
 0x1ed   : > { %v2167_v11 = vor.u32 %v2166_v19, %v2163_v47  ;;  %v2172_v31 = vrot.slane %v2170_v22, 5  ;;  %v2105_v58 = vshrl.u32 %v3004_v43, 16  ;;  %v2108_v59 = vshll.u32 %v3004_v43, 16 }
 0x1ee   : > { %v2154_v0 = vrot.slane %v2153_v55, 4  ;;  %v2093_v20 = vrot.slane %v2091_v54, 4  ;;  %v2096_v52 = vrot.slane %v2094_v57, 5  ;;  %v2114_v37 = vshll.u32 %v3005_v24, 16 }
 0x1ef   : > { %v2168_v26 = vrot.slane %v2167_v11, 4  ;;  %v2102_v62 = vrot.slane %v2100_v49, 5  ;;  %v2107_v27 = vrot.slane %v2105_v58, 4  ;;  %v2110_v63 = vrot.slane %v2108_v59, 5  ;;  %v3299_v59 = vld [vmem:[#allocation2 + $0x40] ss:$8 sps:$4 sm:$0xff]  }
 0x1f0   : > { %v2159_v1 = vsel %vm3469_vm3, %v2154_v0, %v2158_v46  ;;  %v2097_v2 = vor.u32 %v2096_v52, %v2093_v20  ;;  %v2934_v3 = vcombine.low %v1548_v29, %v1548_v29  ;;  %v2935_v16 = vcombine.high %v1548_v29, %v1548_v29  ;;  %v4097_v0 = vpop.f32.mrb[0].mxu1 }
 0x1f1   : > { %v2173_v4 = vsel %vm3469_vm3, %v2168_v26, %v2172_v31  ;;  %v2111_v5 = vor.u32 %v2110_v63, %v2107_v27  ;;  %v2936_v6 = vcombine.low %v1549_v60, %v1549_v60  ;;  %v2937_v7 = vcombine.high %v1549_v60, %v1549_v60  ;;  %v4099_v20 = vpop.f32.mrb[1].mxu1 }
 0x1f2   : > { %v3072_v8 = vcombine.low %v2159_v1, %v2173_v4  ;;  %v2098_v48 = vrot.slane %v2097_v2, 4  ;;  %v1675_v9 = vshrl.u32 %v2934_v3, 16  ;;  %v1678_v12 = vshll.u32 %v2934_v3, 16  ;;  %v4101_v52 = vpop.f32.mrb[2].mxu1 }
 0x1f3   : > { %v2112_v13 = vrot.slane %v2111_v5, 4  ;;  %v2116_v14 = vrot.slane %v2114_v37, 5  ;;  %v1689_v35 = vshrl.u32 %v2936_v6, 16  ;;  %v1692_v44 = vshll.u32 %v2936_v6, 16  ;;  %v4103_v37 = vpop.f32.mrb[3].mxu1 }
 0x1f4   : > { %2454 = vrot.lane.b32.xlu1 %v3072_v8, %s3345_s26  ;;  %v2103_v51 = vsel %vm3469_vm3, %v2098_v48, %v2102_v62  ;;  %v1677_v61 = vrot.slane %v1675_v9, 4  ;;  %v1680_v33 = vrot.slane %v1678_v12, 5  ;;  %v1684_v10 = vshll.u32 %v2935_v16, 16  ;;  %v4105_v60 = vpop.f32.mrb[4].mxu1  ;;  %v3311_v8 = vld [vmem:[#allocation2 + $0x10] ss:$8 sps:$4 sm:$0xff]  }
 0x1f5   : > { %v2117_v25 = vsel %vm3469_vm3, %v2112_v13, %v2116_v14  ;;  %v1691_v32 = vrot.slane %v1689_v35, 4  ;;  %v1694_v21 = vrot.slane %v1692_v44, 5  ;;  %v1698_v18 = vshll.u32 %v2937_v7, 16  ;;  %v4107_v26 = vpop.f32.mrb[5].mxu1  ;;  %v2206_v12 = vld [vmem:[#allocation2 + $0x30] sm:$0x1e] }
 0x1f6   : > { %v3070_v28 = vcombine.low %v2103_v51, %v2117_v25  ;;  %v1681_v34 = vor.u32 %v1680_v33, %v1677_v61  ;;  %v3014_v39 = vcombine.low %v2048_v50, %v2048_v50  ;;  %v3015_v40 = vcombine.high %v2048_v50, %v2048_v50  ;;  %v4109_v62 = vpop.f32.mrb[6].mxu1  ;;  %v2207_v35 = vld [vmem:[#allocation2 + $0x38] sm:$0x1e] }
 0x1f7   : > { %v1695_v53 = vor.u32 %v1694_v21, %v1691_v32  ;;  %v1686_v30 = vrot.slane %v1684_v10, 5  ;;  %v1700_v43 = vrot.slane %v1698_v18, 5  ;;  %v2195_v46 = vor.u32 %v4067_v45, %v3840_v15  ;;  %v4111_v56 = vpop.f32.mrb[7].mxu1 }
 0x1f8   : > { %2450 = vrot.lane.b32.xlu0 %v3070_v28, %s3345_s26  ;;  %v1682_v22 = vrot.slane %v1681_v34, 4  ;;  %v2175_v23 = vshrl.u32 %v3014_v39, 16  ;;  %v2178_v36 = vshll.u32 %v3014_v39, 16  ;;  %v2198_v47 = vshll.u32 %v3017_v41, 16 }
 0x1f9   : > { %v1696_v38 = vrot.slane %v1695_v53, 4  ;;  %v2184_v57 = vshll.u32 %v3015_v40, 16  ;;  %v2196_v31 = vrot.slane %v2195_v46, 4  ;;  %v3026_v44 = vcombine.low %v2206_v12, %v2206_v12 }
 0x1fa   : > { %v1687_v19 = vsel %vm3469_vm3, %v1682_v22, %v1686_v30  ;;  %v2177_v24 = vrot.slane %v2175_v23, 4  ;;  %v2180_v55 = vrot.slane %v2178_v36, 5  ;;  %v2200_v58 = vrot.slane %v2198_v47, 5  ;;  %v3315_v47 = vld [vmem:[#allocation2 + $0x20] ss:$8 sps:$4 sm:$0xff]  }
 0x1fb   : > { %v1701_v54 = vsel %vm3469_vm3, %v1696_v38, %v1700_v43  ;;  %v2186_v45 = vrot.slane %v2184_v57, 5  ;;  %v3027_v50 = vcombine.high %v2206_v12, %v2206_v12  ;;  %v3028_v33 = vcombine.low %v2207_v35, %v2207_v35 }
 0x1fc   : > { %v3049_v49 = vcombine.low %v1687_v19, %v1701_v54  ;;  %v2181_v11 = vor.u32 %v2180_v55, %v2177_v24  ;;  %v2201_v41 = vsel %vm3469_vm3, %v2196_v31, %v2200_v58  ;;  %v3029_v10 = vcombine.high %v2207_v35, %v2207_v35  ;;  %v2209_v55 = vld [vmem:[#allocation2 + $0x48] sm:$0x1e]  ;;  %v2208_v54 = vld [vmem:[#allocation2 + $0x40] sm:$0x1e] }
 0x1fd   : > { %v3038_v21 = vrot.slane %v3026_v44, 9  ;;  %v2268_v18 = vrot.slane %v3027_v50, 5  ;;  %v3039_v28 = vrot.slane %v3028_v33, 9  ;;  %v3030_v31 = vcombine.low %v2208_v54, %v2208_v54 }
 0x1fe   : > { %2320 = vrot.lane.b32.xlu1 %v3049_v49, %s3337_s12  ;;  %v2182_v15 = vrot.slane %v2181_v11, 4  ;;  %v2272_v34 = vrot.slane %v3029_v10, 5  ;;  %v3032_v11 = vcombine.low %v2209_v55, %v2209_v55  ;;  %v3031_v58 = vcombine.high %v2208_v54, %v2208_v54  ;;  %s2716_s12 = sld [smem:[#allocation3]] }
 0x1ff   : > { %v2269_v53 = vsel %vm3836_vm13, %v3038_v21, %v2268_v18 }
 0x200   : > { %v2187_v42 = vsel %vm3469_vm3, %v2182_v15, %v2186_v45  ;;  %vm2506_vm3 = vcmask 654336   ;;  %v2273_v23 = vsel %vm3836_vm13, %v3039_v28, %v2272_v34  ;;  %v3033_v15 = vcombine.high %v2209_v55, %v2209_v55 }
 0x201   : > { %v3073_v29 = vcombine.low %v2187_v42, %v2201_v41  ;;  %v3076_v38 = vcombine.low %v2269_v53, %v2273_v23  ;;  %v3309_v42 = vld [vmem:[#allocation2] ss:$8 sps:$4 sm:$0xff]   ;;  %v3041_v41 = vrot.slane %v3032_v11, 9 }
 0x202   : > { %2436 = vrot.lane.b32.xlu1 %v3299_v59, %s3344_s23 }
 0x204   : > { %v4188_v55 = vstv %s2716_s12 }
 0x206   : > { %2456 = vrot.lane.b32.xlu1 %v3073_v29, %s3345_s26 }
 0x20d   : > { %v2365_v27 = vpop.permute.xlu0 %2364 }
 0x211   : > { %v4113_v63 = vpop.permute.xlu0 %2362 }
 0x214   : > { %v2337_v2 = vpop.permute.xlu1 %2336 }
 0x215   : > { %v4115_v1 = vpop.permute.xlu0 %2334 }
 0x219   : > { %v2405_v3 = vpop.permute.xlu0 %2404 }
 0x22c   : > { %v2433_v16 = vpop.permute.xlu1 %2432 }
 0x22e   : > { %v4117_v4 = vpop.permute.xlu0 %2434 }
 0x230   : > { %v4119_v6 = vpop.permute.xlu1 %2368 }
 0x232   : > { %v2315_v5 = vpop.permute.xlu0 %2314 }
 0x234   : > { %v2367_v48 = vpop.permute.xlu1 %2366 }
 0x236   : > { %v2317_v7 = vpop.permute.xlu0 %2316 }
 0x237   : > { %v2475_v9 = vsel %vm1038_vm5, %v3311_v8, %v2317_v7  ;;  %v2472_v7 = vsel %vm1038_vm5, %v3309_v42, %v2315_v5 }
 0x238   : > { %v2485_v13 = vsel %vm1056_vm7, %v2475_v9, %v2337_v2  ;;  %v2385_v61 = vpop.permute.xlu1 %2384  ;;  %v3040_v2 = vrot.slane %v3030_v31, 9  ;;  %v2483_v9 = vsel %vm1056_vm7, %v2472_v7, %v4115_v1 }
 0x239   : > { %v2493_v51 = vsel %vm1074_vm9, %v2485_v13, %v2365_v27  ;;  %v2491_v44 = vsel %vm1074_vm9, %v2483_v9, %v4113_v63 }
 0x23a   : > { %v2339_v14 = vpop.permute.xlu0 %2338  ;;  %v2501_v25 = vsel %vm1092_vm11, %v2493_v51, %v2385_v61 }
 0x23b   : > { %v2510_v39 = vsel %vm2506_vm3, %v2501_v25, %v2405_v3  ;;  %v2276_v3 = vrot.slane %v3031_v58, 5 }
 0x23c   : > { %v2407_v40 = vpop.permute.xlu1 %2406  ;;  %v2519_v30 = vsel %vm2515_vm14, %v2510_v39, %v2433_v16  ;;  %v2280_v16 = vrot.slane %v3033_v15, 5 }
 0x23e   : > { %v2281_v13 = vsel %vm3836_vm13, %v3041_v41, %v2280_v16 }
 0x240   : > { %v2341_v43 = vpop.permute.xlu1 %2340 }
 0x241   : > { %v2383_v32 = vpop.permute.xlu0 %2382 }
 0x242   : > { %v2499_v51 = vsel %vm1092_vm11, %v2491_v44, %v2383_v32 }
 0x249   : > { %v2453_v22 = vpop.permute.xlu0 %2452 }
 0x24a   : > { %v2529_v36 = vsel %vm2524_vm15, %v2519_v30, %v2453_v22  ;;  %v4176_v30 = vld [vmem:[%s4267_s9] ss:$0 sm:$0xff] }
 0x24b   : > { %2662 = vmatmul.mubr.bf16.vlgmr.msra.gmra.mrb[8].mxu1 %v2529_v36 }
 0x24c   : > { %3089 = vmatprep.mubr.msk.bf16.mxu1 %vm1038_vm5, %v3076_v38 }
 0x24e   : > { %v2319_v46 = vpop.permute.xlu1 %2318 }
 0x24f   : > { %v2478_v19 = vsel %vm1038_vm5, %v3315_v47, %v2319_v46 }
 0x250   : > { %v2487_v57 = vsel %vm1056_vm7, %v2478_v19, %v2339_v14 }
 0x251   : > { %v2495_v45 = vsel %vm1074_vm9, %v2487_v57, %v2367_v48  ;;  %v2277_v48 = vsel %vm3836_vm13, %v3040_v2, %v2276_v3 }
 0x252   : > { %v3077_v50 = vcombine.low %v2277_v48, %v2281_v13 }
 0x254   : > { %v2387_v24 = vpop.permute.xlu0 %2386 }
 0x255   : > { %v2503_v29 = vsel %vm1092_vm11, %v2495_v45, %v2387_v24  ;;  %v4186_v24 = vld [vmem:[%s4264_s6] ss:$0 sm:$0xff] }
 0x256   : > { %v2512_v8 = vsel %vm2506_vm3, %v2503_v29, %v2407_v40  ;;  %v4166_v40 = vld [vmem:[%s4266_s8] ss:$0 sm:$0xff] }
 0x257   : > { %v2521_v35 = vsel %vm2515_vm14, %v2512_v8, %v4117_v4  ;;  %v3324_v4 = vld [vmem:[#allocation2 + $0x30] ss:$8 sps:$4 sm:$0xff]  }
 0x259   : > { %v2389_v49 = vpop.permute.xlu1 %2388 }
 0x25a   : > { %v2403_v59 = vpop.permute.xlu0 %2402 }
 0x25b   : > { %v2508_v1 = vsel %vm2506_vm3, %v2499_v51, %v2403_v59 }
 0x25d   : > { %v2409_v27 = vpop.permute.xlu1 %2408 }
 0x25e   : > { %v2431_v12 = vpop.permute.xlu0 %2430 }
 0x25f   : > { %v2517_v17 = vsel %vm2515_vm14, %v2508_v1, %v2431_v12 }
 0x266   : > { %v2455_v14 = vpop.permute.xlu1 %2454 }
 0x267   : > { %v2532_v5 = vsel %vm2524_vm15, %v2521_v35, %v2455_v14 }
 0x268   : > { %2670 = vmatmul.mubr.bf16.gmra.mrb[12].mxu1 %v2532_v5 }
 0x269   : > { %3090 = vmatprep.mubr.msk.bf16.mxu1 %vm1038_vm5, %v3077_v50 }
 0x26a   : > { %v2451_v61 = vpop.permute.xlu0 %2450 }
 0x26b   : > { %v2526_v33 = vsel %vm2524_vm15, %v2517_v17, %v2451_v61 }
 0x26c   : > { %2654 = vmatmul.mubr.bf16.vlgmr.msra.gmra.mrb[8].mxu0 %v2526_v33 }
 0x270   : > { %v2321_v10 = vpop.permute.xlu1 %2320 }
 0x271   : > { %v2481_v63 = vsel %vm1038_vm5, %v3324_v4, %v2321_v10 }
 0x272   : > { %v2489_v25 = vsel %vm1056_vm7, %v2481_v63, %v2341_v43 }
 0x273   : > { %v2497_v32 = vsel %vm1074_vm9, %v2489_v25, %v4119_v6  ;;  %v4171_v6 = vld [vmem:[%s4263_s5] ss:$0 sm:$0xff] }
 0x274   : > { %v2505_v21 = vsel %vm1092_vm11, %v2497_v32, %v2389_v49  ;;  %v2437_v18 = vpop.permute.xlu1 %2436  ;;  %v1343_v43 = vmul.f32 %v4097_v0, %v4171_v6  ;;  %v1344_v54 = vmul.f32 %v4101_v52, %v4171_v6  ;;  %v1345_v29 = vmul.f32 %v4171_v6, %v4107_v26 }
 0x275   : > { %v2514_v28 = vsel %vm2506_vm3, %v2505_v21, %v2409_v27  ;;  %v1346_v7 = vmul.f32 %v4171_v6, %v4111_v56  ;;  %v1341_v26 = vmul.f32 %v4171_v6, %v4099_v20  ;;  %v1342_v1 = vmul.f32 %v4171_v6, %v4103_v37 }
 0x276   : > { %v2523_v34 = vsel %vm2515_vm14, %v2514_v28, %v2437_v18  ;;  %v1358_v0 = vadd.f32 %v4186_v24, %v1343_v43  ;;  %v1359_v58 = vadd.f32 %v4186_v24, %v1344_v54  ;;  %v1360_v14 = vadd.f32 %v4186_v24, %v1345_v29 }
 0x277   : > { %v1361_v17 = vadd.f32 %v4186_v24, %v1346_v7  ;;  %v1356_v10 = vadd.f32 %v4186_v24, %v1341_v26  ;;  %v1357_v21 = vadd.f32 %v4186_v24, %v1342_v1 }
 0x278   : > { %v2457_v39 = vpop.permute.xlu1 %2456 }
 0x279   : > { %v2535_v53 = vsel %vm2524_vm15, %v2523_v34, %v2457_v39 }
 0x27a   : > { %2678 = vmatmul.mubr.bf16.gmra.mrb[16].mxu1 %v2535_v53 }
 0x31e   : > { %v2663_v22 = vpop.f32.mrb[8].mxu1 }
 0x31f   : > { %v2695_v23 = vmul.f32 %v4166_v40, %v2663_v22  ;;  %v2665_v36 = vpop.f32.mrb[9].mxu1 }
 0x320   : > { %v2666_v38 = vpop.f32.mrb[10].mxu1 }
 0x321   : > { %v2710_v46 = vadd.f32 %v4176_v30, %v2695_v23  ;;  %v2696_v47 = vmul.f32 %v4166_v40, %v2666_v38  ;;  %v2668_v19 = vpop.f32.mrb[11].mxu1  ;;  %v1347_v23 = vmul.f32 %v4105_v60, %v4171_v6 }
 0x323   : > { %v2719_v57 = vmax.f32 %v2710_v46, 0.0  ;;  %v2711_v49 = vadd.f32 %v4176_v30, %v2696_v47  ;;  %v1348_v46 = vmul.f32 %v4109_v62, %v4171_v6  ;;  %v1362_v54 = vadd.f32 %v4186_v24, %v1347_v23 }
 0x325   : > { %v2728_v11 = vmul.f32 %v4188_v55, %v2719_v57  ;;  %v2720_v31 = vmax.f32 %v2711_v49, 0.0 }
 0x327   : > { %v2736_v15 = vadd.f32 %v2728_v11, %v1358_v0  ;;  %v2729_v52 = vmul.f32 %v4188_v55, %v2720_v31  ;;  %v1363_v0 = vadd.f32 %v4186_v24, %v1348_v46 }
 0x329   : > { %2744 = vst.msk [vmem:[%s4199_s14 + $0x10] sm:$0xff] %vm1038_vm5, %v2736_v15  ;;  %v2737_v45 = vadd.f32 %v2729_v52, %v1359_v58 }
 0x32b   : > { %2745 = vst.msk [vmem:[%s4199_s14 + $0x18] sm:$0xff] %vm1038_vm5, %v2737_v45 }
 0x33b   : > { %v2671_v59 = vpop.f32.mrb[12].mxu1 }
 0x33c   : > { %v2697_v42 = vmul.f32 %v4166_v40, %v2671_v59  ;;  %v2673_v41 = vpop.f32.mrb[13].mxu1 }
 0x33d   : > { %v2674_v27 = vpop.f32.mrb[14].mxu1 }
 0x33e   : > { %v2712_v2 = vadd.f32 %v4176_v30, %v2697_v42  ;;  %v2698_v3 = vmul.f32 %v4166_v40, %v2674_v27  ;;  %v2676_v16 = vpop.f32.mrb[15].mxu1 }
 0x33f   : > { %v2655_v8 = vpop.f32.mrb[8].mxu0 }
 0x340   : > { %v2721_v9 = vmax.f32 %v2712_v2, 0.0  ;;  %v2693_v12 = vmul.f32 %v4166_v40, %v2655_v8  ;;  %v2713_v48 = vadd.f32 %v4176_v30, %v2698_v3  ;;  %v2657_v13 = vpop.f32.mrb[9].mxu0 }
 0x341   : > { %v2658_v35 = vpop.f32.mrb[10].mxu0 }
 0x342   : > { %v2730_v44 = vmul.f32 %v4188_v55, %v2721_v9  ;;  %v2708_v5 = vadd.f32 %v4176_v30, %v2693_v12  ;;  %v2722_v50 = vmax.f32 %v2713_v48, 0.0  ;;  %v2694_v56 = vmul.f32 %v4166_v40, %v2658_v35  ;;  %v2660_v51 = vpop.f32.mrb[11].mxu0 }
 0x344   : > { %v2738_v20 = vadd.f32 %v2730_v44, %v1360_v14  ;;  %v2717_v61 = vmax.f32 %v2708_v5, 0.0  ;;  %v2731_v33 = vmul.f32 %v4188_v55, %v2722_v50  ;;  %v2709_v4 = vadd.f32 %v4176_v30, %v2694_v56 }
 0x346   : > { %2746 = vst.msk [vmem:[%s4199_s14 + $0x20] sm:$0xff] %vm1038_vm5, %v2738_v20  ;;  %v2726_v63 = vmul.f32 %v4188_v55, %v2717_v61  ;;  %v2739_v25 = vadd.f32 %v2731_v33, %v1361_v17  ;;  %v2718_v32 = vmax.f32 %v2709_v4, 0.0 }
 0x348   : > { %v2734_v37 = vadd.f32 %v2726_v63, %v1356_v10  ;;  %2747 = vst.msk [vmem:[%s4199_s14 + $0x28] sm:$0xff] %vm1038_vm5, %v2739_v25  ;;  %v2727_v18 = vmul.f32 %v4188_v55, %v2718_v32 }
 0x34a   : > { %2742 = vst.msk [vmem:[%s4199_s14] sm:$0xff] %vm1038_vm5, %v2734_v37  ;;  %v2735_v28 = vadd.f32 %v2727_v18, %v1357_v21 }
 0x34c   : > { %2743 = vst.msk [vmem:[%s4199_s14 + $0x8] sm:$0xff] %vm1038_vm5, %v2735_v28 }
 0x34d   : > { %v2679_v34 = vpop.f32.mrb[16].mxu1 }
 0x34e   : > { %v2699_v39 = vmul.f32 %v4166_v40, %v2679_v34  ;;  %v2681_v53 = vpop.f32.mrb[17].mxu1 }
 0x34f   : > { %v2682_v22 = vpop.f32.mrb[18].mxu1 }
 0x350   : > { %v2714_v36 = vadd.f32 %v4176_v30, %v2699_v39  ;;  %v2700_v38 = vmul.f32 %v4166_v40, %v2682_v22  ;;  %v2684_v43 = vpop.f32.mrb[19].mxu1 }
 0x352   : > { %v2723_v47 = vmax.f32 %v2714_v36, 0.0  ;;  %v2715_v19 = vadd.f32 %v4176_v30, %v2700_v38 }
 0x354   : > { %v2732_v57 = vmul.f32 %v4188_v55, %v2723_v47  ;;  %v2724_v49 = vmax.f32 %v2715_v19, 0.0 }
 0x356   : > { %v2740_v11 = vadd.f32 %v2732_v57, %v1362_v54  ;;  %v2733_v60 = vmul.f32 %v4188_v55, %v2724_v49 }
 0x358   : > { %2748 = vst.msk [vmem:[%s4199_s14 + $0x30] sm:$0xff] %vm1038_vm5, %v2740_v11  ;;  %v2741_v40 = vadd.f32 %v2733_v60, %v1363_v0 }
 0x35a   : > { %2749 = vst.msk [vmem:[%s4199_s14 + $0x38] sm:$0xff] %vm1038_vm5, %v2741_v40 }
 0x35b PF: > { %s22_s19 = sadd.s32 1, %s3332_s19  }
 0x35c   : > { %p19_p4 = scmp.ge.s32.totalorder %s22_s19, 4  }
 0x35e   :  { %21 = sbr.rel (!%p19_p4) target bundleno = 2 (0x2), region = 102 }

</bundles_post_ra>
